<compile_context>
chip_gen: v6e
topology: v6e:2x2x1
jax: 0.10.0
libtpu: 0.0.40
codegen_flags: <defaults>
</compile_context>

<pallas_src>
import functools

import jax
import jax.numpy as jnp
from jax import lax
from jax.experimental import pallas as pl
from jax.experimental.pallas import tpu as pltpu

# ----------------------------- model config (small, synthetic) --------------
BATCH = 2
SEQ = 8
HIDDEN = 32
NUM_HEADS = 2
HEAD_DIM = HIDDEN // NUM_HEADS
INTERMEDIATE = 64
VOCAB = 50
TYPE_VOCAB = 2
MAX_POS = 16
NUM_LAYERS = 2
LN_EPS = 1e-12


# ----------------------------- in-kernel helpers -----------------------------
def _layernorm(x, g, b, eps):
    mu = jnp.mean(x, axis=-1, keepdims=True)
    var = jnp.mean((x - mu) ** 2, axis=-1, keepdims=True)
    return (x - mu) * lax.rsqrt(var + eps) * g + b


def _gelu(x):
    return 0.5 * x * (1.0 + lax.erf(x * (1.0 / jnp.sqrt(2.0).astype(x.dtype))))


# ----------------------------- fused Pallas kernel ---------------------------
def _bert_qa_fused_kernel(
    emb_ref, emb_ln_g_ref, emb_ln_b_ref,
    wqkv_ref, bqkv_ref, wo_ref, bo_ref, ln1_g_ref, ln1_b_ref,
    w1_ref, b1_ref, w2_ref, b2_ref, ln2_g_ref, ln2_b_ref,
    qa_w_ref, qa_b_ref,
    out_ref,
    *, batch, seq, num_heads, head_dim, num_layers, eps,
):
    hidden = num_heads * head_dim
    scale = 1.0 / float(head_dim) ** 0.5

    # Embedding LayerNorm (plain LN; no zero residual stream).
    x = _layernorm(emb_ref[...], emb_ln_g_ref[...], emb_ln_b_ref[...], eps)

    for l in range(num_layers):
        # ---- fused QKV projection: one (H, 3H) matmul on (B*S, H) rows ----
        qkv = jnp.dot(x, wqkv_ref[l], preferred_element_type=jnp.float32) + bqkv_ref[l]
        q = qkv[:, 0 * hidden:1 * hidden]
        k = qkv[:, 1 * hidden:2 * hidden]
        v = qkv[:, 2 * hidden:3 * hidden]

        # ---- self-attention, statically unrolled over (batch, head) ----
        # TODO(synk): the module signature carries no attention_mask, so the
        # unmasked softmax here matches the reference forward exactly.
        ctx_rows = []
        for b in range(batch):
            r0 = b * seq
            head_ctx = []
            for h in range(num_heads):
                c0 = h * head_dim
                qh = q[r0:r0 + seq, c0:c0 + head_dim]
                kh = k[r0:r0 + seq, c0:c0 + head_dim]
                vh = v[r0:r0 + seq, c0:c0 + head_dim]
                # q @ k^T via dot_general contracting last axes (no transpose).
                s = lax.dot_general(
                    qh, kh, (((1,), (1,)), ((), ())),
                    preferred_element_type=jnp.float32,
                ) * scale
                m = jnp.max(s, axis=-1, keepdims=True)
                p = jnp.exp(s - m)
                denom = jnp.sum(p, axis=-1, keepdims=True)
                p = p * pl.reciprocal(denom, approx=True)
                head_ctx.append(
                    jnp.dot(p, vh, preferred_element_type=jnp.float32))
            ctx_rows.append(jnp.concatenate(head_ctx, axis=-1))
        ctx = jnp.concatenate(ctx_rows, axis=0)  # (B*S, H)

        # ---- attention output projection + residual + LN ----
        attn_out = (jnp.dot(ctx, wo_ref[l], preferred_element_type=jnp.float32)
                    + bo_ref[l])
        x = _layernorm(attn_out + x, ln1_g_ref[l], ln1_b_ref[l], eps)

        # ---- FFN (GELU) + residual + LN ----
        ff = jnp.dot(x, w1_ref[l], preferred_element_type=jnp.float32) + b1_ref[l]
        ff = _gelu(ff)
        ff = jnp.dot(ff, w2_ref[l], preferred_element_type=jnp.float32) + b2_ref[l]
        x = _layernorm(ff + x, ln2_g_ref[l], ln2_b_ref[l], eps)

    # ---- fused QA heads: single (H, 2) matmul -> lane-dense (start|end) ----
    logits = (jnp.dot(x, qa_w_ref[...], preferred_element_type=jnp.float32)
              + qa_b_ref[...])
    out_ref[...] = logits.astype(out_ref.dtype)


def fused_bert_qa(emb_flat, params, *, batch, seq):
    n_tokens = emb_flat.shape[0]
    operands = (
        emb_flat,
        params["emb_ln_g"], params["emb_ln_b"],
        params["wqkv"], params["bqkv"],
        params["wo"], params["bo"],
        params["ln1_g"], params["ln1_b"],
        params["w1"], params["b1"],
        params["w2"], params["b2"],
        params["ln2_g"], params["ln2_b"],
        params["qa_w"], params["qa_b"],
    )
    vmem_spec = pl.BlockSpec(memory_space=pltpu.MemorySpace.VMEM)
    kernel = functools.partial(
        _bert_qa_fused_kernel,
        batch=batch, seq=seq, num_heads=NUM_HEADS, head_dim=HEAD_DIM,
        num_layers=NUM_LAYERS, eps=LN_EPS,
    )
    return pl.pallas_call(
        kernel,
        out_shape=jax.ShapeDtypeStruct((n_tokens, 2), jnp.float32),
        in_specs=[vmem_spec] * len(operands),
        out_specs=vmem_spec,
    )(*operands)


# ----------------------------- parameter init --------------------------------
def init_params(key):
    def nrm(k, shape, scale=0.02):
        return (scale * jax.random.normal(k, shape)).astype(jnp.float32)

    keys = iter(jax.random.split(key, 64))
    params = {
        "word_emb": nrm(next(keys), (VOCAB, HIDDEN)),
        "type_emb": nrm(next(keys), (TYPE_VOCAB, HIDDEN)),
        "pos_emb": nrm(next(keys), (MAX_POS, HIDDEN)),
        "emb_ln_g": jnp.ones((1, HIDDEN), jnp.float32),
        "emb_ln_b": jnp.zeros((1, HIDDEN), jnp.float32),
    }
    wqkv, wo, w1, w2 = [], [], [], []
    for _ in range(NUM_LAYERS):
        wq = nrm(next(keys), (HIDDEN, HIDDEN))
        wk = nrm(next(keys), (HIDDEN, HIDDEN))
        wv = nrm(next(keys), (HIDDEN, HIDDEN))
        wqkv.append(jnp.concatenate([wq, wk, wv], axis=1))   # fused (H, 3H)
        wo.append(nrm(next(keys), (HIDDEN, HIDDEN)))
        w1.append(nrm(next(keys), (HIDDEN, INTERMEDIATE)))
        w2.append(nrm(next(keys), (INTERMEDIATE, HIDDEN)))
    params.update(
        wqkv=jnp.stack(wqkv),
        bqkv=jnp.zeros((NUM_LAYERS, 1, 3 * HIDDEN), jnp.float32),
        wo=jnp.stack(wo),
        bo=jnp.zeros((NUM_LAYERS, 1, HIDDEN), jnp.float32),
        ln1_g=jnp.ones((NUM_LAYERS, 1, HIDDEN), jnp.float32),
        ln1_b=jnp.zeros((NUM_LAYERS, 1, HIDDEN), jnp.float32),
        w1=jnp.stack(w1),
        b1=jnp.zeros((NUM_LAYERS, 1, INTERMEDIATE), jnp.float32),
        w2=jnp.stack(w2),
        b2=jnp.zeros((NUM_LAYERS, 1, HIDDEN), jnp.float32),
        ln2_g=jnp.ones((NUM_LAYERS, 1, HIDDEN), jnp.float32),
        ln2_b=jnp.zeros((NUM_LAYERS, 1, HIDDEN), jnp.float32),
        # QA heads: two nn.Linear(H, 1), fused as one lane-dense (H, 2) matmul.
        qa_w=jnp.concatenate(
            [nrm(next(keys), (HIDDEN, 1)), nrm(next(keys), (HIDDEN, 1))], axis=1),
        qa_b=jnp.zeros((1, 2), jnp.float32),
    )
    return params


# ----------------------------- forward pass ----------------------------------
def bert_for_qa(params, input_ids, token_type_ids=None, position_ids=None):
    B, S = input_ids.shape
    if token_type_ids is None:
        token_type_ids = jnp.zeros((B, S), jnp.int32)
    if position_ids is None:
        position_ids = jnp.broadcast_to(jnp.arange(S, dtype=jnp.int32), (B, S))
    # Embedding-table gathers: plain-JAX glue.
    emb = (
        params["word_emb"][input_ids]
        + params["type_emb"][token_type_ids]
        + params["pos_emb"][position_ids]
    )
    emb_flat = emb.reshape(B * S, HIDDEN)          # fold batch into sublanes
    logits = fused_bert_qa(emb_flat, params, batch=B, seq=S)   # (B*S, 2)
    logits = logits.reshape(B, S, 2)
    start_logits = logits[..., 0]                  # matches .squeeze(-1)
    end_logits = logits[..., 1]
    return start_logits, end_logits


# ----------------------------- main ------------------------------------------
if __name__ == "__main__":
    key = jax.random.PRNGKey(0)
    pkey, ikey, tkey = jax.random.split(key, 3)
    params = init_params(pkey)

    input_ids = jax.random.randint(ikey, (BATCH, SEQ), 0, VOCAB, dtype=jnp.int32)
    token_type_ids = jax.random.randint(
        tkey, (BATCH, SEQ), 0, TYPE_VOCAB, dtype=jnp.int32)
    position_ids = jnp.broadcast_to(jnp.arange(SEQ, dtype=jnp.int32), (BATCH, SEQ))

    start_logits, end_logits = jax.jit(bert_for_qa)(
        params, input_ids, token_type_ids, position_ids)
    jax.block_until_ready((start_logits, end_logits))

    assert start_logits.shape == (BATCH, SEQ) and end_logits.shape == (BATCH, SEQ)
    assert bool(jnp.isfinite(start_logits).all()) and bool(jnp.isfinite(end_logits).all())
    print("KERNEL_OK")
</pallas_src>

<mosaic_0001>
module attributes {stable_mosaic.version = 11 : i64} {
  func.func @_bert_qa_fused_kernel(%arg0: memref<16x32xf32, #tpu.memory_space<vmem>>, %arg1: memref<1x32xf32, #tpu.memory_space<vmem>>, %arg2: memref<1x32xf32, #tpu.memory_space<vmem>>, %arg3: memref<2x32x96xf32, #tpu.memory_space<vmem>>, %arg4: memref<2x1x96xf32, #tpu.memory_space<vmem>>, %arg5: memref<2x32x32xf32, #tpu.memory_space<vmem>>, %arg6: memref<2x1x32xf32, #tpu.memory_space<vmem>>, %arg7: memref<2x1x32xf32, #tpu.memory_space<vmem>>, %arg8: memref<2x1x32xf32, #tpu.memory_space<vmem>>, %arg9: memref<2x32x64xf32, #tpu.memory_space<vmem>>, %arg10: memref<2x1x64xf32, #tpu.memory_space<vmem>>, %arg11: memref<2x64x32xf32, #tpu.memory_space<vmem>>, %arg12: memref<2x1x32xf32, #tpu.memory_space<vmem>>, %arg13: memref<2x1x32xf32, #tpu.memory_space<vmem>>, %arg14: memref<2x1x32xf32, #tpu.memory_space<vmem>>, %arg15: memref<32x2xf32, #tpu.memory_space<vmem>>, %arg16: memref<1x2xf32, #tpu.memory_space<vmem>>, %arg17: memref<16x2xf32, #tpu.memory_space<vmem>>) attributes {dimension_semantics = [], scalar_prefetch = 0 : i64, scratch_operands = 0 : i64, tpu.core_type = #tpu.core_type<tc>} {
    %c0 = arith.constant 0 : index
    %c0_0 = arith.constant 0 : index
    %0 = vector.load %arg0[%c0, %c0_0] : memref<16x32xf32, #tpu.memory_space<vmem>>, vector<16x32xf32>
    %c0_1 = arith.constant 0 : index
    %c0_2 = arith.constant 0 : index
    %1 = vector.load %arg1[%c0_1, %c0_2] : memref<1x32xf32, #tpu.memory_space<vmem>>, vector<1x32xf32>
    %c0_3 = arith.constant 0 : index
    %c0_4 = arith.constant 0 : index
    %2 = vector.load %arg2[%c0_3, %c0_4] : memref<1x32xf32, #tpu.memory_space<vmem>>, vector<1x32xf32>
    %cst = arith.constant dense<0.000000e+00> : vector<16xf32>
    %3 = vector.multi_reduction <add>, %0, %cst [1] : vector<16x32xf32> to vector<16xf32>
    %4 = vector.shape_cast %3 : vector<16xf32> to vector<16x1xf32>
    %cst_5 = arith.constant 3.200000e+01 : f32
    %5 = vector.broadcast %cst_5 : f32 to vector<16x1xf32>
    %6 = arith.divf %4, %5 : vector<16x1xf32>
    %7 = vector.broadcast %6 : vector<16x1xf32> to vector<16x32xf32>
    %8 = arith.subf %0, %7 : vector<16x32xf32>
    %9 = arith.mulf %8, %8 : vector<16x32xf32>
    %cst_6 = arith.constant dense<0.000000e+00> : vector<16xf32>
    %10 = vector.multi_reduction <add>, %9, %cst_6 [1] : vector<16x32xf32> to vector<16xf32>
    %11 = vector.shape_cast %10 : vector<16xf32> to vector<16x1xf32>
    %cst_7 = arith.constant 3.200000e+01 : f32
    %12 = vector.broadcast %cst_7 : f32 to vector<16x1xf32>
    %13 = arith.divf %11, %12 : vector<16x1xf32>
    %14 = vector.broadcast %6 : vector<16x1xf32> to vector<16x32xf32>
    %15 = arith.subf %0, %14 : vector<16x32xf32>
    %cst_8 = arith.constant 9.99999996E-13 : f32
    %16 = vector.broadcast %cst_8 : f32 to vector<16x1xf32>
    %17 = arith.addf %13, %16 : vector<16x1xf32>
    %18 = math.rsqrt %17 : vector<16x1xf32>
    %19 = vector.broadcast %18 : vector<16x1xf32> to vector<16x32xf32>
    %20 = arith.mulf %15, %19 : vector<16x32xf32>
    %21 = vector.broadcast %1 : vector<1x32xf32> to vector<16x32xf32>
    %22 = arith.mulf %20, %21 : vector<16x32xf32>
    %23 = vector.broadcast %2 : vector<1x32xf32> to vector<16x32xf32>
    %24 = arith.addf %22, %23 : vector<16x32xf32>
    %c0_9 = arith.constant 0 : index
    %c0_10 = arith.constant 0 : index
    %c0_11 = arith.constant 0 : index
    %25 = vector.load %arg3[%c0_9, %c0_10, %c0_11] : memref<2x32x96xf32, #tpu.memory_space<vmem>>, vector<1x32x96xf32>
    %26 = vector.shape_cast %25 : vector<1x32x96xf32> to vector<32x96xf32>
    %cst_12 = arith.constant dense<0.000000e+00> : vector<16x96xf32>
    %27 = tpu.matmul %24, %26, %cst_12 {dimension_numbers = #tpu.dot_dimension_numbers<[1], [0], [0], [1], [0, 0, 1, 1], [], []>} : vector<16x32xf32>, vector<32x96xf32>, vector<16x96xf32> -> vector<16x96xf32>
    %c0_13 = arith.constant 0 : index
    %c0_14 = arith.constant 0 : index
    %c0_15 = arith.constant 0 : index
    %28 = vector.load %arg4[%c0_13, %c0_14, %c0_15] : memref<2x1x96xf32, #tpu.memory_space<vmem>>, vector<1x1x96xf32>
    %29 = vector.shape_cast %28 : vector<1x1x96xf32> to vector<1x96xf32>
    %30 = vector.broadcast %29 : vector<1x96xf32> to vector<16x96xf32>
    %31 = arith.addf %27, %30 : vector<16x96xf32>
    %32 = vector.extract_strided_slice %31 {offsets = [0, 0], sizes = [16, 32], strides = [1, 1]} : vector<16x96xf32> to vector<16x32xf32>
    %33 = vector.extract_strided_slice %31 {offsets = [0, 32], sizes = [16, 32], strides = [1, 1]} : vector<16x96xf32> to vector<16x32xf32>
    %34 = vector.extract_strided_slice %31 {offsets = [0, 64], sizes = [16, 32], strides = [1, 1]} : vector<16x96xf32> to vector<16x32xf32>
    %35 = vector.extract_strided_slice %32 {offsets = [0, 0], sizes = [8, 16], strides = [1, 1]} : vector<16x32xf32> to vector<8x16xf32>
    %36 = vector.extract_strided_slice %33 {offsets = [0, 0], sizes = [8, 16], strides = [1, 1]} : vector<16x32xf32> to vector<8x16xf32>
    %37 = vector.extract_strided_slice %34 {offsets = [0, 0], sizes = [8, 16], strides = [1, 1]} : vector<16x32xf32> to vector<8x16xf32>
    %cst_16 = arith.constant dense<0.000000e+00> : vector<8x8xf32>
    %38 = tpu.matmul %35, %36, %cst_16 {dimension_numbers = #tpu.dot_dimension_numbers<[1], [1], [0], [0], [0, 0, 1, 0], [], []>} : vector<8x16xf32>, vector<8x16xf32>, vector<8x8xf32> -> vector<8x8xf32>
    %cst_17 = arith.constant 2.500000e-01 : f32
    %39 = vector.broadcast %cst_17 : f32 to vector<8x8xf32>
    %40 = arith.mulf %38, %39 : vector<8x8xf32>
    %cst_18 = arith.constant dense<0xFF800000> : vector<8xf32>
    %41 = vector.multi_reduction <maximumf>, %40, %cst_18 [1] : vector<8x8xf32> to vector<8xf32>
    %42 = vector.shape_cast %41 : vector<8xf32> to vector<8x1xf32>
    %43 = vector.broadcast %42 : vector<8x1xf32> to vector<8x8xf32>
    %44 = arith.subf %40, %43 : vector<8x8xf32>
    %45 = math.exp %44 : vector<8x8xf32>
    %cst_19 = arith.constant dense<0.000000e+00> : vector<8xf32>
    %46 = vector.multi_reduction <add>, %45, %cst_19 [1] : vector<8x8xf32> to vector<8xf32>
    %47 = vector.shape_cast %46 : vector<8xf32> to vector<8x1xf32>
    %48 = tpu.reciprocal %47 {approx = true} : vector<8x1xf32> -> vector<8x1xf32>
    %49 = vector.broadcast %48 : vector<8x1xf32> to vector<8x8xf32>
    %50 = arith.mulf %45, %49 : vector<8x8xf32>
    %cst_20 = arith.constant dense<0.000000e+00> : vector<8x16xf32>
    %51 = tpu.matmul %50, %37, %cst_20 {dimension_numbers = #tpu.dot_dimension_numbers<[1], [0], [0], [1], [0, 0, 1, 1], [], []>} : vector<8x8xf32>, vector<8x16xf32>, vector<8x16xf32> -> vector<8x16xf32>
    %52 = vector.extract_strided_slice %32 {offsets = [0, 16], sizes = [8, 16], strides = [1, 1]} : vector<16x32xf32> to vector<8x16xf32>
    %53 = vector.extract_strided_slice %33 {offsets = [0, 16], sizes = [8, 16], strides = [1, 1]} : vector<16x32xf32> to vector<8x16xf32>
    %54 = vector.extract_strided_slice %34 {offsets = [0, 16], sizes = [8, 16], strides = [1, 1]} : vector<16x32xf32> to vector<8x16xf32>
    %cst_21 = arith.constant dense<0.000000e+00> : vector<8x8xf32>
    %55 = tpu.matmul %52, %53, %cst_21 {dimension_numbers = #tpu.dot_dimension_numbers<[1], [1], [0], [0], [0, 0, 1, 0], [], []>} : vector<8x16xf32>, vector<8x16xf32>, vector<8x8xf32> -> vector<8x8xf32>
    %cst_22 = arith.constant 2.500000e-01 : f32
    %56 = vector.broadcast %cst_22 : f32 to vector<8x8xf32>
    %57 = arith.mulf %55, %56 : vector<8x8xf32>
    %cst_23 = arith.constant dense<0xFF800000> : vector<8xf32>
    %58 = vector.multi_reduction <maximumf>, %57, %cst_23 [1] : vector<8x8xf32> to vector<8xf32>
    %59 = vector.shape_cast %58 : vector<8xf32> to vector<8x1xf32>
    %60 = vector.broadcast %59 : vector<8x1xf32> to vector<8x8xf32>
    %61 = arith.subf %57, %60 : vector<8x8xf32>
    %62 = math.exp %61 : vector<8x8xf32>
    %cst_24 = arith.constant dense<0.000000e+00> : vector<8xf32>
    %63 = vector.multi_reduction <add>, %62, %cst_24 [1] : vector<8x8xf32> to vector<8xf32>
    %64 = vector.shape_cast %63 : vector<8xf32> to vector<8x1xf32>
    %65 = tpu.reciprocal %64 {approx = true} : vector<8x1xf32> -> vector<8x1xf32>
    %66 = vector.broadcast %65 : vector<8x1xf32> to vector<8x8xf32>
    %67 = arith.mulf %62, %66 : vector<8x8xf32>
    %cst_25 = arith.constant dense<0.000000e+00> : vector<8x16xf32>
    %68 = tpu.matmul %67, %54, %cst_25 {dimension_numbers = #tpu.dot_dimension_numbers<[1], [0], [0], [1], [0, 0, 1, 1], [], []>} : vector<8x8xf32>, vector<8x16xf32>, vector<8x16xf32> -> vector<8x16xf32>
    %69 = tpu.concatenate %51, %68 in 1 : vector<8x16xf32>, vector<8x16xf32> -> vector<8x32xf32>
    %70 = vector.extract_strided_slice %32 {offsets = [8, 0], sizes = [8, 16], strides = [1, 1]} : vector<16x32xf32> to vector<8x16xf32>
    %71 = vector.extract_strided_slice %33 {offsets = [8, 0], sizes = [8, 16], strides = [1, 1]} : vector<16x32xf32> to vector<8x16xf32>
    %72 = vector.extract_strided_slice %34 {offsets = [8, 0], sizes = [8, 16], strides = [1, 1]} : vector<16x32xf32> to vector<8x16xf32>
    %cst_26 = arith.constant dense<0.000000e+00> : vector<8x8xf32>
    %73 = tpu.matmul %70, %71, %cst_26 {dimension_numbers = #tpu.dot_dimension_numbers<[1], [1], [0], [0], [0, 0, 1, 0], [], []>} : vector<8x16xf32>, vector<8x16xf32>, vector<8x8xf32> -> vector<8x8xf32>
    %cst_27 = arith.constant 2.500000e-01 : f32
    %74 = vector.broadcast %cst_27 : f32 to vector<8x8xf32>
    %75 = arith.mulf %73, %74 : vector<8x8xf32>
    %cst_28 = arith.constant dense<0xFF800000> : vector<8xf32>
    %76 = vector.multi_reduction <maximumf>, %75, %cst_28 [1] : vector<8x8xf32> to vector<8xf32>
    %77 = vector.shape_cast %76 : vector<8xf32> to vector<8x1xf32>
    %78 = vector.broadcast %77 : vector<8x1xf32> to vector<8x8xf32>
    %79 = arith.subf %75, %78 : vector<8x8xf32>
    %80 = math.exp %79 : vector<8x8xf32>
    %cst_29 = arith.constant dense<0.000000e+00> : vector<8xf32>
    %81 = vector.multi_reduction <add>, %80, %cst_29 [1] : vector<8x8xf32> to vector<8xf32>
    %82 = vector.shape_cast %81 : vector<8xf32> to vector<8x1xf32>
    %83 = tpu.reciprocal %82 {approx = true} : vector<8x1xf32> -> vector<8x1xf32>
    %84 = vector.broadcast %83 : vector<8x1xf32> to vector<8x8xf32>
    %85 = arith.mulf %80, %84 : vector<8x8xf32>
    %cst_30 = arith.constant dense<0.000000e+00> : vector<8x16xf32>
    %86 = tpu.matmul %85, %72, %cst_30 {dimension_numbers = #tpu.dot_dimension_numbers<[1], [0], [0], [1], [0, 0, 1, 1], [], []>} : vector<8x8xf32>, vector<8x16xf32>, vector<8x16xf32> -> vector<8x16xf32>
    %87 = vector.extract_strided_slice %32 {offsets = [8, 16], sizes = [8, 16], strides = [1, 1]} : vector<16x32xf32> to vector<8x16xf32>
    %88 = vector.extract_strided_slice %33 {offsets = [8, 16], sizes = [8, 16], strides = [1, 1]} : vector<16x32xf32> to vector<8x16xf32>
    %89 = vector.extract_strided_slice %34 {offsets = [8, 16], sizes = [8, 16], strides = [1, 1]} : vector<16x32xf32> to vector<8x16xf32>
    %cst_31 = arith.constant dense<0.000000e+00> : vector<8x8xf32>
    %90 = tpu.matmul %87, %88, %cst_31 {dimension_numbers = #tpu.dot_dimension_numbers<[1], [1], [0], [0], [0, 0, 1, 0], [], []>} : vector<8x16xf32>, vector<8x16xf32>, vector<8x8xf32> -> vector<8x8xf32>
    %cst_32 = arith.constant 2.500000e-01 : f32
    %91 = vector.broadcast %cst_32 : f32 to vector<8x8xf32>
    %92 = arith.mulf %90, %91 : vector<8x8xf32>
    %cst_33 = arith.constant dense<0xFF800000> : vector<8xf32>
    %93 = vector.multi_reduction <maximumf>, %92, %cst_33 [1] : vector<8x8xf32> to vector<8xf32>
    %94 = vector.shape_cast %93 : vector<8xf32> to vector<8x1xf32>
    %95 = vector.broadcast %94 : vector<8x1xf32> to vector<8x8xf32>
    %96 = arith.subf %92, %95 : vector<8x8xf32>
    %97 = math.exp %96 : vector<8x8xf32>
    %cst_34 = arith.constant dense<0.000000e+00> : vector<8xf32>
    %98 = vector.multi_reduction <add>, %97, %cst_34 [1] : vector<8x8xf32> to vector<8xf32>
    %99 = vector.shape_cast %98 : vector<8xf32> to vector<8x1xf32>
    %100 = tpu.reciprocal %99 {approx = true} : vector<8x1xf32> -> vector<8x1xf32>
    %101 = vector.broadcast %100 : vector<8x1xf32> to vector<8x8xf32>
    %102 = arith.mulf %97, %101 : vector<8x8xf32>
    %cst_35 = arith.constant dense<0.000000e+00> : vector<8x16xf32>
    %103 = tpu.matmul %102, %89, %cst_35 {dimension_numbers = #tpu.dot_dimension_numbers<[1], [0], [0], [1], [0, 0, 1, 1], [], []>} : vector<8x8xf32>, vector<8x16xf32>, vector<8x16xf32> -> vector<8x16xf32>
    %104 = tpu.concatenate %86, %103 in 1 : vector<8x16xf32>, vector<8x16xf32> -> vector<8x32xf32>
    %105 = tpu.concatenate %69, %104 in 0 : vector<8x32xf32>, vector<8x32xf32> -> vector<16x32xf32>
    %c0_36 = arith.constant 0 : index
    %c0_37 = arith.constant 0 : index
    %c0_38 = arith.constant 0 : index
    %106 = vector.load %arg5[%c0_36, %c0_37, %c0_38] : memref<2x32x32xf32, #tpu.memory_space<vmem>>, vector<1x32x32xf32>
    %107 = vector.shape_cast %106 : vector<1x32x32xf32> to vector<32x32xf32>
    %cst_39 = arith.constant dense<0.000000e+00> : vector<16x32xf32>
    %108 = tpu.matmul %105, %107, %cst_39 {dimension_numbers = #tpu.dot_dimension_numbers<[1], [0], [0], [1], [0, 0, 1, 1], [], []>} : vector<16x32xf32>, vector<32x32xf32>, vector<16x32xf32> -> vector<16x32xf32>
    %c0_40 = arith.constant 0 : index
    %c0_41 = arith.constant 0 : index
    %c0_42 = arith.constant 0 : index
    %109 = vector.load %arg6[%c0_40, %c0_41, %c0_42] : memref<2x1x32xf32, #tpu.memory_space<vmem>>, vector<1x1x32xf32>
    %110 = vector.shape_cast %109 : vector<1x1x32xf32> to vector<1x32xf32>
    %111 = vector.broadcast %110 : vector<1x32xf32> to vector<16x32xf32>
    %112 = arith.addf %108, %111 : vector<16x32xf32>
    %113 = arith.addf %112, %24 : vector<16x32xf32>
    %c0_43 = arith.constant 0 : index
    %c0_44 = arith.constant 0 : index
    %c0_45 = arith.constant 0 : index
    %114 = vector.load %arg7[%c0_43, %c0_44, %c0_45] : memref<2x1x32xf32, #tpu.memory_space<vmem>>, vector<1x1x32xf32>
    %115 = vector.shape_cast %114 : vector<1x1x32xf32> to vector<1x32xf32>
    %c0_46 = arith.constant 0 : index
    %c0_47 = arith.constant 0 : index
    %c0_48 = arith.constant 0 : index
    %116 = vector.load %arg8[%c0_46, %c0_47, %c0_48] : memref<2x1x32xf32, #tpu.memory_space<vmem>>, vector<1x1x32xf32>
    %117 = vector.shape_cast %116 : vector<1x1x32xf32> to vector<1x32xf32>
    %cst_49 = arith.constant dense<0.000000e+00> : vector<16xf32>
    %118 = vector.multi_reduction <add>, %113, %cst_49 [1] : vector<16x32xf32> to vector<16xf32>
    %119 = vector.shape_cast %118 : vector<16xf32> to vector<16x1xf32>
    %cst_50 = arith.constant 3.200000e+01 : f32
    %120 = vector.broadcast %cst_50 : f32 to vector<16x1xf32>
    %121 = arith.divf %119, %120 : vector<16x1xf32>
    %122 = vector.broadcast %121 : vector<16x1xf32> to vector<16x32xf32>
    %123 = arith.subf %113, %122 : vector<16x32xf32>
    %124 = arith.mulf %123, %123 : vector<16x32xf32>
    %cst_51 = arith.constant dense<0.000000e+00> : vector<16xf32>
    %125 = vector.multi_reduction <add>, %124, %cst_51 [1] : vector<16x32xf32> to vector<16xf32>
    %126 = vector.shape_cast %125 : vector<16xf32> to vector<16x1xf32>
    %cst_52 = arith.constant 3.200000e+01 : f32
    %127 = vector.broadcast %cst_52 : f32 to vector<16x1xf32>
    %128 = arith.divf %126, %127 : vector<16x1xf32>
    %129 = vector.broadcast %121 : vector<16x1xf32> to vector<16x32xf32>
    %130 = arith.subf %113, %129 : vector<16x32xf32>
    %cst_53 = arith.constant 9.99999996E-13 : f32
    %131 = vector.broadcast %cst_53 : f32 to vector<16x1xf32>
    %132 = arith.addf %128, %131 : vector<16x1xf32>
    %133 = math.rsqrt %132 : vector<16x1xf32>
    %134 = vector.broadcast %133 : vector<16x1xf32> to vector<16x32xf32>
    %135 = arith.mulf %130, %134 : vector<16x32xf32>
    %136 = vector.broadcast %115 : vector<1x32xf32> to vector<16x32xf32>
    %137 = arith.mulf %135, %136 : vector<16x32xf32>
    %138 = vector.broadcast %117 : vector<1x32xf32> to vector<16x32xf32>
    %139 = arith.addf %137, %138 : vector<16x32xf32>
    %c0_54 = arith.constant 0 : index
    %c0_55 = arith.constant 0 : index
    %c0_56 = arith.constant 0 : index
    %140 = vector.load %arg9[%c0_54, %c0_55, %c0_56] : memref<2x32x64xf32, #tpu.memory_space<vmem>>, vector<1x32x64xf32>
    %141 = vector.shape_cast %140 : vector<1x32x64xf32> to vector<32x64xf32>
    %cst_57 = arith.constant dense<0.000000e+00> : vector<16x64xf32>
    %142 = tpu.matmul %139, %141, %cst_57 {dimension_numbers = #tpu.dot_dimension_numbers<[1], [0], [0], [1], [0, 0, 1, 1], [], []>} : vector<16x32xf32>, vector<32x64xf32>, vector<16x64xf32> -> vector<16x64xf32>
    %c0_58 = arith.constant 0 : index
    %c0_59 = arith.constant 0 : index
    %c0_60 = arith.constant 0 : index
    %143 = vector.load %arg10[%c0_58, %c0_59, %c0_60] : memref<2x1x64xf32, #tpu.memory_space<vmem>>, vector<1x1x64xf32>
    %144 = vector.shape_cast %143 : vector<1x1x64xf32> to vector<1x64xf32>
    %145 = vector.broadcast %144 : vector<1x64xf32> to vector<16x64xf32>
    %146 = arith.addf %142, %145 : vector<16x64xf32>
    %cst_61 = arith.constant 5.000000e-01 : f32
    %147 = vector.broadcast %cst_61 : f32 to vector<16x64xf32>
    %148 = arith.mulf %147, %146 : vector<16x64xf32>
    %cst_62 = arith.constant 2.000000e+00 : f32
    %149 = math.sqrt %cst_62 : f32
    %cst_63 = arith.constant 1.000000e+00 : f32
    %150 = arith.divf %cst_63, %149 : f32
    %151 = vector.broadcast %150 : f32 to vector<16x64xf32>
    %152 = arith.mulf %146, %151 : vector<16x64xf32>
    %153 = math.erf %152 : vector<16x64xf32>
    %cst_64 = arith.constant 1.000000e+00 : f32
    %154 = vector.broadcast %cst_64 : f32 to vector<16x64xf32>
    %155 = arith.addf %154, %153 : vector<16x64xf32>
    %156 = arith.mulf %148, %155 : vector<16x64xf32>
    %c0_65 = arith.constant 0 : index
    %c0_66 = arith.constant 0 : index
    %c0_67 = arith.constant 0 : index
    %157 = vector.load %arg11[%c0_65, %c0_66, %c0_67] : memref<2x64x32xf32, #tpu.memory_space<vmem>>, vector<1x64x32xf32>
    %158 = vector.shape_cast %157 : vector<1x64x32xf32> to vector<64x32xf32>
    %cst_68 = arith.constant dense<0.000000e+00> : vector<16x32xf32>
    %159 = tpu.matmul %156, %158, %cst_68 {dimension_numbers = #tpu.dot_dimension_numbers<[1], [0], [0], [1], [0, 0, 1, 1], [], []>} : vector<16x64xf32>, vector<64x32xf32>, vector<16x32xf32> -> vector<16x32xf32>
    %c0_69 = arith.constant 0 : index
    %c0_70 = arith.constant 0 : index
    %c0_71 = arith.constant 0 : index
    %160 = vector.load %arg12[%c0_69, %c0_70, %c0_71] : memref<2x1x32xf32, #tpu.memory_space<vmem>>, vector<1x1x32xf32>
    %161 = vector.shape_cast %160 : vector<1x1x32xf32> to vector<1x32xf32>
    %162 = vector.broadcast %161 : vector<1x32xf32> to vector<16x32xf32>
    %163 = arith.addf %159, %162 : vector<16x32xf32>
    %164 = arith.addf %163, %139 : vector<16x32xf32>
    %c0_72 = arith.constant 0 : index
    %c0_73 = arith.constant 0 : index
    %c0_74 = arith.constant 0 : index
    %165 = vector.load %arg13[%c0_72, %c0_73, %c0_74] : memref<2x1x32xf32, #tpu.memory_space<vmem>>, vector<1x1x32xf32>
    %166 = vector.shape_cast %165 : vector<1x1x32xf32> to vector<1x32xf32>
    %c0_75 = arith.constant 0 : index
    %c0_76 = arith.constant 0 : index
    %c0_77 = arith.constant 0 : index
    %167 = vector.load %arg14[%c0_75, %c0_76, %c0_77] : memref<2x1x32xf32, #tpu.memory_space<vmem>>, vector<1x1x32xf32>
    %168 = vector.shape_cast %167 : vector<1x1x32xf32> to vector<1x32xf32>
    %cst_78 = arith.constant dense<0.000000e+00> : vector<16xf32>
    %169 = vector.multi_reduction <add>, %164, %cst_78 [1] : vector<16x32xf32> to vector<16xf32>
    %170 = vector.shape_cast %169 : vector<16xf32> to vector<16x1xf32>
    %cst_79 = arith.constant 3.200000e+01 : f32
    %171 = vector.broadcast %cst_79 : f32 to vector<16x1xf32>
    %172 = arith.divf %170, %171 : vector<16x1xf32>
    %173 = vector.broadcast %172 : vector<16x1xf32> to vector<16x32xf32>
    %174 = arith.subf %164, %173 : vector<16x32xf32>
    %175 = arith.mulf %174, %174 : vector<16x32xf32>
    %cst_80 = arith.constant dense<0.000000e+00> : vector<16xf32>
    %176 = vector.multi_reduction <add>, %175, %cst_80 [1] : vector<16x32xf32> to vector<16xf32>
    %177 = vector.shape_cast %176 : vector<16xf32> to vector<16x1xf32>
    %cst_81 = arith.constant 3.200000e+01 : f32
    %178 = vector.broadcast %cst_81 : f32 to vector<16x1xf32>
    %179 = arith.divf %177, %178 : vector<16x1xf32>
    %180 = vector.broadcast %172 : vector<16x1xf32> to vector<16x32xf32>
    %181 = arith.subf %164, %180 : vector<16x32xf32>
    %cst_82 = arith.constant 9.99999996E-13 : f32
    %182 = vector.broadcast %cst_82 : f32 to vector<16x1xf32>
    %183 = arith.addf %179, %182 : vector<16x1xf32>
    %184 = math.rsqrt %183 : vector<16x1xf32>
    %185 = vector.broadcast %184 : vector<16x1xf32> to vector<16x32xf32>
    %186 = arith.mulf %181, %185 : vector<16x32xf32>
    %187 = vector.broadcast %166 : vector<1x32xf32> to vector<16x32xf32>
    %188 = arith.mulf %186, %187 : vector<16x32xf32>
    %189 = vector.broadcast %168 : vector<1x32xf32> to vector<16x32xf32>
    %190 = arith.addf %188, %189 : vector<16x32xf32>
    %c1 = arith.constant 1 : index
    %c0_83 = arith.constant 0 : index
    %c0_84 = arith.constant 0 : index
    %191 = vector.load %arg3[%c1, %c0_83, %c0_84] : memref<2x32x96xf32, #tpu.memory_space<vmem>>, vector<1x32x96xf32>
    %192 = vector.shape_cast %191 : vector<1x32x96xf32> to vector<32x96xf32>
    %cst_85 = arith.constant dense<0.000000e+00> : vector<16x96xf32>
    %193 = tpu.matmul %190, %192, %cst_85 {dimension_numbers = #tpu.dot_dimension_numbers<[1], [0], [0], [1], [0, 0, 1, 1], [], []>} : vector<16x32xf32>, vector<32x96xf32>, vector<16x96xf32> -> vector<16x96xf32>
    %c1_86 = arith.constant 1 : index
    %c0_87 = arith.constant 0 : index
    %c0_88 = arith.constant 0 : index
    %194 = vector.load %arg4[%c1_86, %c0_87, %c0_88] : memref<2x1x96xf32, #tpu.memory_space<vmem>>, vector<1x1x96xf32>
    %195 = vector.shape_cast %194 : vector<1x1x96xf32> to vector<1x96xf32>
    %196 = vector.broadcast %195 : vector<1x96xf32> to vector<16x96xf32>
    %197 = arith.addf %193, %196 : vector<16x96xf32>
    %198 = vector.extract_strided_slice %197 {offsets = [0, 0], sizes = [16, 32], strides = [1, 1]} : vector<16x96xf32> to vector<16x32xf32>
    %199 = vector.extract_strided_slice %197 {offsets = [0, 32], sizes = [16, 32], strides = [1, 1]} : vector<16x96xf32> to vector<16x32xf32>
    %200 = vector.extract_strided_slice %197 {offsets = [0, 64], sizes = [16, 32], strides = [1, 1]} : vector<16x96xf32> to vector<16x32xf32>
    %201 = vector.extract_strided_slice %198 {offsets = [0, 0], sizes = [8, 16], strides = [1, 1]} : vector<16x32xf32> to vector<8x16xf32>
    %202 = vector.extract_strided_slice %199 {offsets = [0, 0], sizes = [8, 16], strides = [1, 1]} : vector<16x32xf32> to vector<8x16xf32>
    %203 = vector.extract_strided_slice %200 {offsets = [0, 0], sizes = [8, 16], strides = [1, 1]} : vector<16x32xf32> to vector<8x16xf32>
    %cst_89 = arith.constant dense<0.000000e+00> : vector<8x8xf32>
    %204 = tpu.matmul %201, %202, %cst_89 {dimension_numbers = #tpu.dot_dimension_numbers<[1], [1], [0], [0], [0, 0, 1, 0], [], []>} : vector<8x16xf32>, vector<8x16xf32>, vector<8x8xf32> -> vector<8x8xf32>
    %cst_90 = arith.constant 2.500000e-01 : f32
    %205 = vector.broadcast %cst_90 : f32 to vector<8x8xf32>
    %206 = arith.mulf %204, %205 : vector<8x8xf32>
    %cst_91 = arith.constant dense<0xFF800000> : vector<8xf32>
    %207 = vector.multi_reduction <maximumf>, %206, %cst_91 [1] : vector<8x8xf32> to vector<8xf32>
    %208 = vector.shape_cast %207 : vector<8xf32> to vector<8x1xf32>
    %209 = vector.broadcast %208 : vector<8x1xf32> to vector<8x8xf32>
    %210 = arith.subf %206, %209 : vector<8x8xf32>
    %211 = math.exp %210 : vector<8x8xf32>
    %cst_92 = arith.constant dense<0.000000e+00> : vector<8xf32>
    %212 = vector.multi_reduction <add>, %211, %cst_92 [1] : vector<8x8xf32> to vector<8xf32>
    %213 = vector.shape_cast %212 : vector<8xf32> to vector<8x1xf32>
    %214 = tpu.reciprocal %213 {approx = true} : vector<8x1xf32> -> vector<8x1xf32>
    %215 = vector.broadcast %214 : vector<8x1xf32> to vector<8x8xf32>
    %216 = arith.mulf %211, %215 : vector<8x8xf32>
    %cst_93 = arith.constant dense<0.000000e+00> : vector<8x16xf32>
    %217 = tpu.matmul %216, %203, %cst_93 {dimension_numbers = #tpu.dot_dimension_numbers<[1], [0], [0], [1], [0, 0, 1, 1], [], []>} : vector<8x8xf32>, vector<8x16xf32>, vector<8x16xf32> -> vector<8x16xf32>
    %218 = vector.extract_strided_slice %198 {offsets = [0, 16], sizes = [8, 16], strides = [1, 1]} : vector<16x32xf32> to vector<8x16xf32>
    %219 = vector.extract_strided_slice %199 {offsets = [0, 16], sizes = [8, 16], strides = [1, 1]} : vector<16x32xf32> to vector<8x16xf32>
    %220 = vector.extract_strided_slice %200 {offsets = [0, 16], sizes = [8, 16], strides = [1, 1]} : vector<16x32xf32> to vector<8x16xf32>
    %cst_94 = arith.constant dense<0.000000e+00> : vector<8x8xf32>
    %221 = tpu.matmul %218, %219, %cst_94 {dimension_numbers = #tpu.dot_dimension_numbers<[1], [1], [0], [0], [0, 0, 1, 0], [], []>} : vector<8x16xf32>, vector<8x16xf32>, vector<8x8xf32> -> vector<8x8xf32>
    %cst_95 = arith.constant 2.500000e-01 : f32
    %222 = vector.broadcast %cst_95 : f32 to vector<8x8xf32>
    %223 = arith.mulf %221, %222 : vector<8x8xf32>
    %cst_96 = arith.constant dense<0xFF800000> : vector<8xf32>
    %224 = vector.multi_reduction <maximumf>, %223, %cst_96 [1] : vector<8x8xf32> to vector<8xf32>
    %225 = vector.shape_cast %224 : vector<8xf32> to vector<8x1xf32>
    %226 = vector.broadcast %225 : vector<8x1xf32> to vector<8x8xf32>
    %227 = arith.subf %223, %226 : vector<8x8xf32>
    %228 = math.exp %227 : vector<8x8xf32>
    %cst_97 = arith.constant dense<0.000000e+00> : vector<8xf32>
    %229 = vector.multi_reduction <add>, %228, %cst_97 [1] : vector<8x8xf32> to vector<8xf32>
    %230 = vector.shape_cast %229 : vector<8xf32> to vector<8x1xf32>
    %231 = tpu.reciprocal %230 {approx = true} : vector<8x1xf32> -> vector<8x1xf32>
    %232 = vector.broadcast %231 : vector<8x1xf32> to vector<8x8xf32>
    %233 = arith.mulf %228, %232 : vector<8x8xf32>
    %cst_98 = arith.constant dense<0.000000e+00> : vector<8x16xf32>
    %234 = tpu.matmul %233, %220, %cst_98 {dimension_numbers = #tpu.dot_dimension_numbers<[1], [0], [0], [1], [0, 0, 1, 1], [], []>} : vector<8x8xf32>, vector<8x16xf32>, vector<8x16xf32> -> vector<8x16xf32>
    %235 = tpu.concatenate %217, %234 in 1 : vector<8x16xf32>, vector<8x16xf32> -> vector<8x32xf32>
    %236 = vector.extract_strided_slice %198 {offsets = [8, 0], sizes = [8, 16], strides = [1, 1]} : vector<16x32xf32> to vector<8x16xf32>
    %237 = vector.extract_strided_slice %199 {offsets = [8, 0], sizes = [8, 16], strides = [1, 1]} : vector<16x32xf32> to vector<8x16xf32>
    %238 = vector.extract_strided_slice %200 {offsets = [8, 0], sizes = [8, 16], strides = [1, 1]} : vector<16x32xf32> to vector<8x16xf32>
    %cst_99 = arith.constant dense<0.000000e+00> : vector<8x8xf32>
    %239 = tpu.matmul %236, %237, %cst_99 {dimension_numbers = #tpu.dot_dimension_numbers<[1], [1], [0], [0], [0, 0, 1, 0], [], []>} : vector<8x16xf32>, vector<8x16xf32>, vector<8x8xf32> -> vector<8x8xf32>
    %cst_100 = arith.constant 2.500000e-01 : f32
    %240 = vector.broadcast %cst_100 : f32 to vector<8x8xf32>
    %241 = arith.mulf %239, %240 : vector<8x8xf32>
    %cst_101 = arith.constant dense<0xFF800000> : vector<8xf32>
    %242 = vector.multi_reduction <maximumf>, %241, %cst_101 [1] : vector<8x8xf32> to vector<8xf32>
    %243 = vector.shape_cast %242 : vector<8xf32> to vector<8x1xf32>
    %244 = vector.broadcast %243 : vector<8x1xf32> to vector<8x8xf32>
    %245 = arith.subf %241, %244 : vector<8x8xf32>
    %246 = math.exp %245 : vector<8x8xf32>
    %cst_102 = arith.constant dense<0.000000e+00> : vector<8xf32>
    %247 = vector.multi_reduction <add>, %246, %cst_102 [1] : vector<8x8xf32> to vector<8xf32>
    %248 = vector.shape_cast %247 : vector<8xf32> to vector<8x1xf32>
    %249 = tpu.reciprocal %248 {approx = true} : vector<8x1xf32> -> vector<8x1xf32>
    %250 = vector.broadcast %249 : vector<8x1xf32> to vector<8x8xf32>
    %251 = arith.mulf %246, %250 : vector<8x8xf32>
    %cst_103 = arith.constant dense<0.000000e+00> : vector<8x16xf32>
    %252 = tpu.matmul %251, %238, %cst_103 {dimension_numbers = #tpu.dot_dimension_numbers<[1], [0], [0], [1], [0, 0, 1, 1], [], []>} : vector<8x8xf32>, vector<8x16xf32>, vector<8x16xf32> -> vector<8x16xf32>
    %253 = vector.extract_strided_slice %198 {offsets = [8, 16], sizes = [8, 16], strides = [1, 1]} : vector<16x32xf32> to vector<8x16xf32>
    %254 = vector.extract_strided_slice %199 {offsets = [8, 16], sizes = [8, 16], strides = [1, 1]} : vector<16x32xf32> to vector<8x16xf32>
    %255 = vector.extract_strided_slice %200 {offsets = [8, 16], sizes = [8, 16], strides = [1, 1]} : vector<16x32xf32> to vector<8x16xf32>
    %cst_104 = arith.constant dense<0.000000e+00> : vector<8x8xf32>
    %256 = tpu.matmul %253, %254, %cst_104 {dimension_numbers = #tpu.dot_dimension_numbers<[1], [1], [0], [0], [0, 0, 1, 0], [], []>} : vector<8x16xf32>, vector<8x16xf32>, vector<8x8xf32> -> vector<8x8xf32>
    %cst_105 = arith.constant 2.500000e-01 : f32
    %257 = vector.broadcast %cst_105 : f32 to vector<8x8xf32>
    %258 = arith.mulf %256, %257 : vector<8x8xf32>
    %cst_106 = arith.constant dense<0xFF800000> : vector<8xf32>
    %259 = vector.multi_reduction <maximumf>, %258, %cst_106 [1] : vector<8x8xf32> to vector<8xf32>
    %260 = vector.shape_cast %259 : vector<8xf32> to vector<8x1xf32>
    %261 = vector.broadcast %260 : vector<8x1xf32> to vector<8x8xf32>
    %262 = arith.subf %258, %261 : vector<8x8xf32>
    %263 = math.exp %262 : vector<8x8xf32>
    %cst_107 = arith.constant dense<0.000000e+00> : vector<8xf32>
    %264 = vector.multi_reduction <add>, %263, %cst_107 [1] : vector<8x8xf32> to vector<8xf32>
    %265 = vector.shape_cast %264 : vector<8xf32> to vector<8x1xf32>
    %266 = tpu.reciprocal %265 {approx = true} : vector<8x1xf32> -> vector<8x1xf32>
    %267 = vector.broadcast %266 : vector<8x1xf32> to vector<8x8xf32>
    %268 = arith.mulf %263, %267 : vector<8x8xf32>
    %cst_108 = arith.constant dense<0.000000e+00> : vector<8x16xf32>
    %269 = tpu.matmul %268, %255, %cst_108 {dimension_numbers = #tpu.dot_dimension_numbers<[1], [0], [0], [1], [0, 0, 1, 1], [], []>} : vector<8x8xf32>, vector<8x16xf32>, vector<8x16xf32> -> vector<8x16xf32>
    %270 = tpu.concatenate %252, %269 in 1 : vector<8x16xf32>, vector<8x16xf32> -> vector<8x32xf32>
    %271 = tpu.concatenate %235, %270 in 0 : vector<8x32xf32>, vector<8x32xf32> -> vector<16x32xf32>
    %c1_109 = arith.constant 1 : index
    %c0_110 = arith.constant 0 : index
    %c0_111 = arith.constant 0 : index
    %272 = vector.load %arg5[%c1_109, %c0_110, %c0_111] : memref<2x32x32xf32, #tpu.memory_space<vmem>>, vector<1x32x32xf32>
    %273 = vector.shape_cast %272 : vector<1x32x32xf32> to vector<32x32xf32>
    %cst_112 = arith.constant dense<0.000000e+00> : vector<16x32xf32>
    %274 = tpu.matmul %271, %273, %cst_112 {dimension_numbers = #tpu.dot_dimension_numbers<[1], [0], [0], [1], [0, 0, 1, 1], [], []>} : vector<16x32xf32>, vector<32x32xf32>, vector<16x32xf32> -> vector<16x32xf32>
    %c1_113 = arith.constant 1 : index
    %c0_114 = arith.constant 0 : index
    %c0_115 = arith.constant 0 : index
    %275 = vector.load %arg6[%c1_113, %c0_114, %c0_115] : memref<2x1x32xf32, #tpu.memory_space<vmem>>, vector<1x1x32xf32>
    %276 = vector.shape_cast %275 : vector<1x1x32xf32> to vector<1x32xf32>
    %277 = vector.broadcast %276 : vector<1x32xf32> to vector<16x32xf32>
    %278 = arith.addf %274, %277 : vector<16x32xf32>
    %279 = arith.addf %278, %190 : vector<16x32xf32>
    %c1_116 = arith.constant 1 : index
    %c0_117 = arith.constant 0 : index
    %c0_118 = arith.constant 0 : index
    %280 = vector.load %arg7[%c1_116, %c0_117, %c0_118] : memref<2x1x32xf32, #tpu.memory_space<vmem>>, vector<1x1x32xf32>
    %281 = vector.shape_cast %280 : vector<1x1x32xf32> to vector<1x32xf32>
    %c1_119 = arith.constant 1 : index
    %c0_120 = arith.constant 0 : index
    %c0_121 = arith.constant 0 : index
    %282 = vector.load %arg8[%c1_119, %c0_120, %c0_121] : memref<2x1x32xf32, #tpu.memory_space<vmem>>, vector<1x1x32xf32>
    %283 = vector.shape_cast %282 : vector<1x1x32xf32> to vector<1x32xf32>
    %cst_122 = arith.constant dense<0.000000e+00> : vector<16xf32>
    %284 = vector.multi_reduction <add>, %279, %cst_122 [1] : vector<16x32xf32> to vector<16xf32>
    %285 = vector.shape_cast %284 : vector<16xf32> to vector<16x1xf32>
    %cst_123 = arith.constant 3.200000e+01 : f32
    %286 = vector.broadcast %cst_123 : f32 to vector<16x1xf32>
    %287 = arith.divf %285, %286 : vector<16x1xf32>
    %288 = vector.broadcast %287 : vector<16x1xf32> to vector<16x32xf32>
    %289 = arith.subf %279, %288 : vector<16x32xf32>
    %290 = arith.mulf %289, %289 : vector<16x32xf32>
    %cst_124 = arith.constant dense<0.000000e+00> : vector<16xf32>
    %291 = vector.multi_reduction <add>, %290, %cst_124 [1] : vector<16x32xf32> to vector<16xf32>
    %292 = vector.shape_cast %291 : vector<16xf32> to vector<16x1xf32>
    %cst_125 = arith.constant 3.200000e+01 : f32
    %293 = vector.broadcast %cst_125 : f32 to vector<16x1xf32>
    %294 = arith.divf %292, %293 : vector<16x1xf32>
    %295 = vector.broadcast %287 : vector<16x1xf32> to vector<16x32xf32>
    %296 = arith.subf %279, %295 : vector<16x32xf32>
    %cst_126 = arith.constant 9.99999996E-13 : f32
    %297 = vector.broadcast %cst_126 : f32 to vector<16x1xf32>
    %298 = arith.addf %294, %297 : vector<16x1xf32>
    %299 = math.rsqrt %298 : vector<16x1xf32>
    %300 = vector.broadcast %299 : vector<16x1xf32> to vector<16x32xf32>
    %301 = arith.mulf %296, %300 : vector<16x32xf32>
    %302 = vector.broadcast %281 : vector<1x32xf32> to vector<16x32xf32>
    %303 = arith.mulf %301, %302 : vector<16x32xf32>
    %304 = vector.broadcast %283 : vector<1x32xf32> to vector<16x32xf32>
    %305 = arith.addf %303, %304 : vector<16x32xf32>
    %c1_127 = arith.constant 1 : index
    %c0_128 = arith.constant 0 : index
    %c0_129 = arith.constant 0 : index
    %306 = vector.load %arg9[%c1_127, %c0_128, %c0_129] : memref<2x32x64xf32, #tpu.memory_space<vmem>>, vector<1x32x64xf32>
    %307 = vector.shape_cast %306 : vector<1x32x64xf32> to vector<32x64xf32>
    %cst_130 = arith.constant dense<0.000000e+00> : vector<16x64xf32>
    %308 = tpu.matmul %305, %307, %cst_130 {dimension_numbers = #tpu.dot_dimension_numbers<[1], [0], [0], [1], [0, 0, 1, 1], [], []>} : vector<16x32xf32>, vector<32x64xf32>, vector<16x64xf32> -> vector<16x64xf32>
    %c1_131 = arith.constant 1 : index
    %c0_132 = arith.constant 0 : index
    %c0_133 = arith.constant 0 : index
    %309 = vector.load %arg10[%c1_131, %c0_132, %c0_133] : memref<2x1x64xf32, #tpu.memory_space<vmem>>, vector<1x1x64xf32>
    %310 = vector.shape_cast %309 : vector<1x1x64xf32> to vector<1x64xf32>
    %311 = vector.broadcast %310 : vector<1x64xf32> to vector<16x64xf32>
    %312 = arith.addf %308, %311 : vector<16x64xf32>
    %cst_134 = arith.constant 5.000000e-01 : f32
    %313 = vector.broadcast %cst_134 : f32 to vector<16x64xf32>
    %314 = arith.mulf %313, %312 : vector<16x64xf32>
    %cst_135 = arith.constant 2.000000e+00 : f32
    %315 = math.sqrt %cst_135 : f32
    %cst_136 = arith.constant 1.000000e+00 : f32
    %316 = arith.divf %cst_136, %315 : f32
    %317 = vector.broadcast %316 : f32 to vector<16x64xf32>
    %318 = arith.mulf %312, %317 : vector<16x64xf32>
    %319 = math.erf %318 : vector<16x64xf32>
    %cst_137 = arith.constant 1.000000e+00 : f32
    %320 = vector.broadcast %cst_137 : f32 to vector<16x64xf32>
    %321 = arith.addf %320, %319 : vector<16x64xf32>
    %322 = arith.mulf %314, %321 : vector<16x64xf32>
    %c1_138 = arith.constant 1 : index
    %c0_139 = arith.constant 0 : index
    %c0_140 = arith.constant 0 : index
    %323 = vector.load %arg11[%c1_138, %c0_139, %c0_140] : memref<2x64x32xf32, #tpu.memory_space<vmem>>, vector<1x64x32xf32>
    %324 = vector.shape_cast %323 : vector<1x64x32xf32> to vector<64x32xf32>
    %cst_141 = arith.constant dense<0.000000e+00> : vector<16x32xf32>
    %325 = tpu.matmul %322, %324, %cst_141 {dimension_numbers = #tpu.dot_dimension_numbers<[1], [0], [0], [1], [0, 0, 1, 1], [], []>} : vector<16x64xf32>, vector<64x32xf32>, vector<16x32xf32> -> vector<16x32xf32>
    %c1_142 = arith.constant 1 : index
    %c0_143 = arith.constant 0 : index
    %c0_144 = arith.constant 0 : index
    %326 = vector.load %arg12[%c1_142, %c0_143, %c0_144] : memref<2x1x32xf32, #tpu.memory_space<vmem>>, vector<1x1x32xf32>
    %327 = vector.shape_cast %326 : vector<1x1x32xf32> to vector<1x32xf32>
    %328 = vector.broadcast %327 : vector<1x32xf32> to vector<16x32xf32>
    %329 = arith.addf %325, %328 : vector<16x32xf32>
    %330 = arith.addf %329, %305 : vector<16x32xf32>
    %c1_145 = arith.constant 1 : index
    %c0_146 = arith.constant 0 : index
    %c0_147 = arith.constant 0 : index
    %331 = vector.load %arg13[%c1_145, %c0_146, %c0_147] : memref<2x1x32xf32, #tpu.memory_space<vmem>>, vector<1x1x32xf32>
    %332 = vector.shape_cast %331 : vector<1x1x32xf32> to vector<1x32xf32>
    %c1_148 = arith.constant 1 : index
    %c0_149 = arith.constant 0 : index
    %c0_150 = arith.constant 0 : index
    %333 = vector.load %arg14[%c1_148, %c0_149, %c0_150] : memref<2x1x32xf32, #tpu.memory_space<vmem>>, vector<1x1x32xf32>
    %334 = vector.shape_cast %333 : vector<1x1x32xf32> to vector<1x32xf32>
    %cst_151 = arith.constant dense<0.000000e+00> : vector<16xf32>
    %335 = vector.multi_reduction <add>, %330, %cst_151 [1] : vector<16x32xf32> to vector<16xf32>
    %336 = vector.shape_cast %335 : vector<16xf32> to vector<16x1xf32>
    %cst_152 = arith.constant 3.200000e+01 : f32
    %337 = vector.broadcast %cst_152 : f32 to vector<16x1xf32>
    %338 = arith.divf %336, %337 : vector<16x1xf32>
    %339 = vector.broadcast %338 : vector<16x1xf32> to vector<16x32xf32>
    %340 = arith.subf %330, %339 : vector<16x32xf32>
    %341 = arith.mulf %340, %340 : vector<16x32xf32>
    %cst_153 = arith.constant dense<0.000000e+00> : vector<16xf32>
    %342 = vector.multi_reduction <add>, %341, %cst_153 [1] : vector<16x32xf32> to vector<16xf32>
    %343 = vector.shape_cast %342 : vector<16xf32> to vector<16x1xf32>
    %cst_154 = arith.constant 3.200000e+01 : f32
    %344 = vector.broadcast %cst_154 : f32 to vector<16x1xf32>
    %345 = arith.divf %343, %344 : vector<16x1xf32>
    %346 = vector.broadcast %338 : vector<16x1xf32> to vector<16x32xf32>
    %347 = arith.subf %330, %346 : vector<16x32xf32>
    %cst_155 = arith.constant 9.99999996E-13 : f32
    %348 = vector.broadcast %cst_155 : f32 to vector<16x1xf32>
    %349 = arith.addf %345, %348 : vector<16x1xf32>
    %350 = math.rsqrt %349 : vector<16x1xf32>
    %351 = vector.broadcast %350 : vector<16x1xf32> to vector<16x32xf32>
    %352 = arith.mulf %347, %351 : vector<16x32xf32>
    %353 = vector.broadcast %332 : vector<1x32xf32> to vector<16x32xf32>
    %354 = arith.mulf %352, %353 : vector<16x32xf32>
    %355 = vector.broadcast %334 : vector<1x32xf32> to vector<16x32xf32>
    %356 = arith.addf %354, %355 : vector<16x32xf32>
    %c0_156 = arith.constant 0 : index
    %c0_157 = arith.constant 0 : index
    %357 = vector.load %arg15[%c0_156, %c0_157] : memref<32x2xf32, #tpu.memory_space<vmem>>, vector<32x2xf32>
    %cst_158 = arith.constant dense<0.000000e+00> : vector<16x2xf32>
    %358 = tpu.matmul %356, %357, %cst_158 {dimension_numbers = #tpu.dot_dimension_numbers<[1], [0], [0], [1], [0, 0, 1, 1], [], []>} : vector<16x32xf32>, vector<32x2xf32>, vector<16x2xf32> -> vector<16x2xf32>
    %c0_159 = arith.constant 0 : index
    %c0_160 = arith.constant 0 : index
    %359 = vector.load %arg16[%c0_159, %c0_160] : memref<1x2xf32, #tpu.memory_space<vmem>>, vector<1x2xf32>
    %360 = vector.broadcast %359 : vector<1x2xf32> to vector<16x2xf32>
    %361 = arith.addf %358, %360 : vector<16x2xf32>
    %c0_161 = arith.constant 0 : index
    %c0_162 = arith.constant 0 : index
    %362 = vector.load %arg17[%c0_161, %c0_162] : memref<16x2xf32, #tpu.memory_space<vmem>>, vector<16x2xf32>
    tpu.vector_store %arg17[%c0_161, %c0_162], %361 {strides = array<i32>} : memref<16x2xf32, #tpu.memory_space<vmem>>, vector<16x2xf32>,
    return
  }
}

</mosaic_0001>

<bundles_post_ra>
// kernel: bert_for_qa.1
= control target key start
LH: loop header
LB: loop body
LE: loop exit
PB: predicated region body
PF: predicated region fallthrough
CT: control target
= control target key end

     0   :  { %vm60_vm0 = vcmask 261120   ;;  %v2956_v34 = vmov 0.0   ;;  %vm2957_vm1 = vmmov 0   ;;  %s2958_s27 = smov 96   ;;  %s2959_s28 = smov 80   ;;  %vm199_vm2 = vcmask 130048   ;;  %s3460_s0 = inlined_call_operand.vmem [shape: f32[16,32], index: 0, kind: input, shape index: {}]   ;;  %s3461_s3 = inlined_call_operand.vmem [shape: f32[2,32,96], index: 3, kind: input, shape index: {}]   ;;  %s3462_s1 = inlined_call_operand.vmem [shape: f32[1,32], index: 1, kind: input, shape index: {}]   ;;  %s3463_s2 = inlined_call_operand.vmem [shape: f32[1,32], index: 2, kind: input, shape index: {}]   ;;  %s3464_s4 = inlined_call_operand.vmem [shape: f32[2,1,96], index: 4, kind: input, shape index: {}]   ;;  %s3465_s5 = inlined_call_operand.vmem [shape: f32[2,32,32], index: 5, kind: input, shape index: {}]   ;;  %s3466_s6 = inlined_call_operand.vmem [shape: f32[2,1,32], index: 6, kind: input, shape index: {}]   ;;  %s3467_s9 = inlined_call_operand.vmem [shape: f32[2,32,64], index: 9, kind: input, shape index: {}]   ;;  %s3468_s7 = inlined_call_operand.vmem [shape: f32[2,1,32], index: 7, kind: input, shape index: {}]   ;;  %s3469_s8 = inlined_call_operand.vmem [shape: f32[2,1,32], index: 8, kind: input, shape index: {}]   ;;  %s3470_s11 = inlined_call_operand.vmem [shape: f32[2,64,32], index: 11, kind: input, shape index: {}]   ;;  %s3471_s10 = inlined_call_operand.vmem [shape: f32[2,1,64], index: 10, kind: input, shape index: {}]   ;;  %s3472_s12 = inlined_call_operand.vmem [shape: f32[2,1,32], index: 12, kind: input, shape index: {}]   ;;  %s3473_s13 = inlined_call_operand.vmem [shape: f32[2,1,32], index: 13, kind: input, shape index: {}]   ;;  %s3474_s14 = inlined_call_operand.vmem [shape: f32[2,1,32], index: 14, kind: input, shape index: {}]   ;;  %s3475_s15 = inlined_call_operand.vmem [shape: f32[32,2], index: 15, kind: input, shape index: {}]   ;;  %s3476_s16 = inlined_call_operand.vmem [shape: f32[1,2], index: 16, kind: input, shape index: {}]   ;;  %s3477_s17 = inlined_call_operand.vmem [shape: f32[16,2], index: 17, kind: output, shape index: {}]  }
   0x1   :  { %3480 = sst [smem:[#allocation2_spill]] %s3460_s0  ;;  %v2510_v25 = vld [vmem:[%s3462_s1] ss:$0 sm:$0xff]  ;;  %2704 = vmatprep.subr.mxu1 %v2956_v34  ;;  %2706 = vmatprep.mubr.msk.f32.mxu1 %vm2957_vm1, %v2956_v34  ;;  %s2960_s29 = smov 112   ;;  %vm275_vm3 = vcmask 64512   ;;  %vm1125_vm4 = vcmask 523264  }
   0x2   :  { %3481 = sst [smem:[#allocation3_spill]] %s3461_s3  ;;  %v2511_v27 = vld [vmem:[%s3463_s2] ss:$0 sm:$0xff]  ;;  %s2961_s0 = smov 64   ;;  %vm2503_vm5 = vcmask 15360  }
   0x3   :  { %s3482_s26 = sld [smem:[#allocation2_spill]]  ;;  %v2512_v36 = vld [vmem:[%s3464_s4] ss:$0 sm:$0xff]  ;;  %s2962_s18 = smov 48  }
   0x4   :  { %s3483_s30 = sld [smem:[#allocation3_spill]] }
   0x9   :  { %v56_v0 = vld [vmem:[%s3482_s26] sm:$0xff]  ;;  %v57_v1 = vld [vmem:[%s3482_s26 + $0x8] sm:$0xff]  ;;  %s2963_s26 = smov 16  }
   0xa   :  { %v61_v2 = vsel %vm60_vm0, %v56_v0, 0.0  ;;  %v64_v3 = vsel %vm60_vm0, %v57_v1, 0.0  ;;  %v107_v14 = vld [vmem:[%s3483_s30 + $0x18] sm:$0xff]  ;;  %v106_v15 = vld [vmem:[%s3483_s30 + $0x10] sm:$0xff]  ;;  %v105_v16 = vld [vmem:[%s3483_s30 + $0x8] sm:$0xff] }
   0xb   :  { %62 = vadd.xlane.f32.xlu0 %v61_v2  ;;  %2693 = vmatprep.subr.mxu0 %v107_v14  ;;  %v104_v17 = vld [vmem:[%s3483_s30] sm:$0xff] }
   0xc   :  { %2694 = vmatpush3.msra.mxu0 %v107_v14 }
   0xd   :  { %2695 = vmatprep.subr.mxu0 %v106_v15 }
   0xe   :  { %2696 = vmatpush3.msra.mxu0 %v106_v15 }
   0xf   :  { %65 = vadd.xlane.f32.xlu0 %v64_v3  ;;  %2697 = vmatprep.subr.mxu0 %v105_v16 }
  0x10   :  { %2698 = vmatpush3.msra.mxu0 %v105_v16 }
  0x11   :  { %2699 = vmatprep.subr.mxu0 %v104_v17 }
  0x12   :  { %2700 = vmatpush3.msra.mxu0 %v104_v17 }
  0x13   :  { %2724 = vmatprep.subr.mxu0 %v2956_v34 }
  0x94   :  { %v63_v4 = vpop.xlane.xlu0 %62 }
  0x95   :  { %v68_v5 = vmul.f32 0.03125, %v63_v4 }
  0x97   :  { %v70_v6 = vsub.f32 %v56_v0, %v68_v5 }
  0x98   :  { %v66_v7 = vpop.xlane.xlu0 %65 }
  0x99   :  { %v69_v8 = vmul.f32 0.03125, %v66_v7  ;;  %v72_v9 = vmul.f32 %v70_v6, %v70_v6 }
  0x9b   :  { %v71_v10 = vsub.f32 %v57_v1, %v69_v8  ;;  %v74_v11 = vsel %vm60_vm0, %v72_v9, 0.0 }
  0x9c   :  { %75 = vadd.xlane.f32.xlu1 %v74_v11 }
  0x9d   :  { %v73_v12 = vmul.f32 %v71_v10, %v71_v10 }
  0x9f   :  { %v77_v13 = vsel %vm60_vm0, %v73_v12, 0.0 }
  0xa0   :  { %78 = vadd.xlane.f32.xlu1 %v77_v13 }
 0x125   :  { %v76_v18 = vpop.xlane.xlu1 %75 }
 0x126   :  { %v80_v19 = vmul.f32 0.03125, %v76_v18 }
 0x128   :  { %v82_v20 = vadd.f32 1e-12, %v80_v19 }
 0x129   :  { %v79_v21 = vpop.xlane.xlu1 %78 }
 0x12a   :  { %2896 = vrsqrt.f32 %v82_v20  ;;  %v81_v22 = vmul.f32 0.03125, %v79_v21 }
 0x12c   :  { %v83_v23 = vadd.f32 1e-12, %v81_v22 }
 0x12e   :  { %2898 = vrsqrt.f32 %v83_v23 }
 0x137   :  { %v2897_v24 = vpop.eup %2896 }
 0x138   :  { %v86_v26 = vmul.f32 %v2897_v24, %v70_v6 }
 0x13a   :  { %v94_v28 = vmul.f32 %v2510_v25, %v86_v26 }
 0x13b   :  { %v2899_v29 = vpop.eup %2898 }
 0x13c   :  { %v87_v30 = vmul.f32 %v2899_v29, %v71_v10  ;;  %v3082_v31 = vadd.f32 %v2511_v27, %v94_v28 }
 0x13e   :  { %v95_v32 = vmul.f32 %v2510_v25, %v87_v30  ;;  %2701 = vmatprep.mubr.msk.f32.mxu0 %vm60_vm0, %v3082_v31 }
 0x140   :  { %v3086_v33 = vadd.f32 %v2511_v27, %v95_v32 }
 0x142   :  { %2702 = vmatmul.mubr.msk.f32.vlgmr.msra.gmra.mxu0 %vm60_vm0, %v3086_v33 }
 0x143   :  { %2726 = vmatprep.mubr.msk.f32.mxu0 %vm2957_vm1, %v2956_v34 }
 0x202   :  { %v2703_v35 = vpop.f32.mrf.mxu0 }
 0x203   :  { %v3105_v39 = vadd.f32 %v2703_v35, %v2512_v36 }
 0x204   :  { %v187_v37 = vpop.f32.mrf.mxu0 }
 0x205   :  { %v3099_v38 = vadd.f32 %v2512_v36, %v187_v37 }
 0x207   :  { %197 = vrot.lane.b32.xlu0 %v3099_v38, %s2958_s27 }
 0x20b   :  { %365 = vrot.lane.b32.xlu0 %v3099_v38, %s2959_s28 }
 0x20f   :  { %535 = vrot.lane.b32.xlu0 %v3105_v39, %s2958_s27 }
 0x213   :  { %699 = vrot.lane.b32.xlu0 %v3105_v39, %s2960_s29 }
 0x279   :  { %v198_v40 = vpop.permute.xlu0 %197 }
 0x27a   :  { %2705 = vmatpush3.xpose.msk.msra.mxu1 %vm199_vm2, %v198_v40  ;;  %v872_v40 = vld [vmem:[%s3465_s5 + $0x10] sm:$0xff] }
 0x27b   :  { %2709 = vmatprep.subr.mxu1 %v2956_v34 }
 0x27d   :  { %2707 = vmatmul.mubr.msk.f32.vlgmr.msra.gmra.mxu1 %vm199_vm2, %v3099_v38  ;;  %v366_v41 = vpop.permute.xlu0 %365 }
 0x27e   :  { %2711 = vmatprep.mubr.msk.f32.mxu1 %vm2957_vm1, %v2956_v34 }
 0x281   :  { %v536_v42 = vpop.permute.xlu0 %535 }
 0x282   :  { %2725 = vmatpush3.xpose.msk.msra.mxu0 %vm199_vm2, %v536_v42  ;;  %v870_v42 = vld [vmem:[%s3465_s5] sm:$0xff] }
 0x283   :  { %2734 = vmatprep.subr.mxu0 %v2956_v34 }
 0x285   :  { %2727 = vmatmul.mubr.msk.f32.vlgmr.msra.gmra.mxu0 %vm199_vm2, %v3105_v39  ;;  %v700_v60 = vpop.permute.xlu0 %699 }
 0x286   :  { %2736 = vmatprep.mubr.msk.f32.mxu0 %vm2957_vm1, %v2956_v34 }
 0x33d   :  { %v270_v43 = vpop.f32.mrf.mxu1 }
 0x33e   :  { %v274_v44 = vmul.f32 0.25, %v270_v43 }
 0x33f   :  { %v2708_v45 = vpop.f32.mrf.mxu1 }
 0x340   :  { %v276_v46 = vsel %vm275_vm3, %v274_v44, -inf }
 0x341   :  { %277 = vmax.xlane.f32.xlu1 %v276_v46 }
 0x345   :  { %v607_v47 = vpop.f32.mrf.mxu0 }
 0x346   :  { %v611_v48 = vmul.f32 0.25, %v607_v47 }
 0x347   :  { %v2728_v49 = vpop.f32.mrf.mxu0 }
 0x348   :  { %v612_v50 = vsel %vm275_vm3, %v611_v48, -inf }
 0x349   :  { %613 = vmax.xlane.f32.xlu0 %v612_v50 }
 0x352   :  { %287 = vrot.lane.b32.xlu1 %v3099_v38, %s2961_s0 }
 0x3ca   :  { %v278_v51 = vpop.xlane.xlu1 %277 }
 0x3cb   :  { %v279_v52 = vsub.f32 %v274_v44, %v278_v51 }
 0x3cd   :  { %v280_v53 = vmul.f32 1.442695, %v279_v52 }
 0x3ce   :  { %v288_v54 = vpop.permute.xlu1 %287 }
 0x3cf   :  { %2900 = vpow2.f32 %v280_v53  ;;  %2710 = vmatpush3.msra.mxu1 %v288_v54  ;;  %v2527_v53 = vld [vmem:[%s3466_s6] ss:$0 sm:$0xff] }
 0x3d0   :  { %2714 = vmatprep.subr.mxu1 %v2956_v34 }
 0x3d2   :  { %v614_v63 = vpop.xlane.xlu0 %613 }
 0x3d3   :  { %v615_v0 = vsub.f32 %v611_v48, %v614_v63 }
 0x3d5   :  { %v616_v1 = vmul.f32 1.442695, %v615_v0 }
 0x3dc   :  { %v2901_v55 = vpop.eup %2900 }
 0x3dd   :  { %v282_v56 = vsel %vm275_vm3, %v2901_v55, 0.0 }
 0x3de   :  { %283 = vadd.xlane.f32.xlu1 %v282_v56 }
 0x3ef   :  { %363 = vrot.lane.b32.xlu1 %v3099_v38, %s2960_s29 }
 0x3f3   :  { %701 = vrot.lane.b32.xlu1 %v3105_v39, %s2959_s28 }
 0x467   :  { %v284_v57 = vpop.xlane.xlu1 %283 }
 0x468   :  { %2902 = vrcp.f32 %v284_v57 }
 0x469   :  { %2904 = vpow2.f32 %v616_v1 }
 0x46b   :  { %v364_v58 = vpop.permute.xlu1 %363 }
 0x46f   :  { %v702_v59 = vpop.permute.xlu1 %701 }
 0x470   :  { %2735 = vmatpush3.xpose.msk.msra.mxu0 %vm199_vm2, %v702_v59 }
 0x473   :  { %2737 = vmatmul.mubr.msk.f32.vlgmr.msra.gmra.mxu0 %vm199_vm2, %v700_v60 }
 0x475   :  { %v2903_v61 = vpop.eup %2902 }
 0x476   :  { %v286_v62 = vmul.f32 %v2903_v61, %v2901_v55  ;;  %v2905_v12 = vpop.eup %2904 }
 0x477   :  { %v618_v13 = vsel %vm275_vm3, %v2905_v12, 0.0 }
 0x478   :  { %2712 = vmatmul.mubr.msk.f32.vlgmr.msra.gmra.mxu1 %vm275_vm3, %v286_v62 }
 0x479   :  { %2715 = vmatpush3.xpose.msk.msra.mxu1 %vm199_vm2, %v366_v41  ;;  %2716 = vmatprep.mubr.msk.f32.mxu1 %vm2957_vm1, %v2956_v34  ;;  %v871_v41 = vld [vmem:[%s3465_s5 + $0x8] sm:$0xff] }
 0x47a   :  { %2719 = vmatprep.subr.mxu1 %v2956_v34 }
 0x47c   :  { %2717 = vmatmul.mubr.msk.f32.vlgmr.msra.gmra.mxu1 %vm199_vm2, %v364_v58 }
 0x47d   :  { %2721 = vmatprep.mubr.msk.f32.mxu1 %vm2957_vm1, %v2956_v34 }
 0x533   :  { %v773_v2 = vpop.f32.mrf.mxu0 }
 0x534   :  { %v777_v3 = vmul.f32 0.25, %v773_v2 }
 0x535   :  { %v2738_v4 = vpop.f32.mrf.mxu0 }
 0x536   :  { %v778_v5 = vsel %vm275_vm3, %v777_v3, -inf }
 0x537   :  { %779 = vmax.xlane.f32.xlu0 %v778_v5 }
 0x538   :  { %v3144_v6 = vpop.f32.mrf.mxu1 }
 0x53a   :  { %v2713_v7 = vpop.f32.mrf.mxu1 }
 0x53b   :  { %v1010_v7 = vld [vmem:[%s3467_s9 + $0x10] sm:$0xff] }
 0x53c   :  { %v437_v8 = vpop.f32.mrf.mxu1 }
 0x53d   :  { %v441_v9 = vmul.f32 0.25, %v437_v8  ;;  %v1009_v8 = vld [vmem:[%s3467_s9 + $0x8] sm:$0xff] }
 0x53e   :  { %v2718_v10 = vpop.f32.mrf.mxu1 }
 0x53f   :  { %v442_v11 = vsel %vm275_vm3, %v441_v9, -inf }
 0x540   :  { %443 = vmax.xlane.f32.xlu1 %v442_v11 }
 0x544   :  { %619 = vadd.xlane.f32.xlu1 %v618_v13 }
 0x555   :  { %453 = vrot.lane.b32.xlu1 %v3099_v38, %s2962_s18 }
 0x559   :  { %789 = vrot.lane.b32.xlu1 %v3105_v39, %s2962_s18 }
 0x5c0   :  { %v780_v14 = vpop.xlane.xlu0 %779 }
 0x5c1   :  { %v781_v15 = vsub.f32 %v777_v3, %v780_v14 }
 0x5c3   :  { %v782_v16 = vmul.f32 1.442695, %v781_v15 }
 0x5c5   :  { %2906 = vpow2.f32 %v782_v16 }
 0x5c9   :  { %v444_v17 = vpop.xlane.xlu1 %443 }
 0x5ca   :  { %v445_v18 = vsub.f32 %v441_v9, %v444_v17  ;;  %v1008_v9 = vld [vmem:[%s3467_s9] sm:$0xff] }
 0x5cb   :  { %v2530_v17 = vld [vmem:[%s3468_s7] ss:$0 sm:$0xff] }
 0x5cc   :  { %v446_v19 = vmul.f32 1.442695, %v445_v18 }
 0x5cd   :  { %v620_v20 = vpop.xlane.xlu1 %619 }
 0x5ce   :  { %2908 = vpow2.f32 %v446_v19  ;;  %v2531_v19 = vld [vmem:[%s3469_s8] ss:$0 sm:$0xff] }
 0x5d1   :  { %v454_v21 = vpop.permute.xlu1 %453 }
 0x5d2   :  { %v2907_v22 = vpop.eup %2906  ;;  %2720 = vmatpush3.msra.mxu1 %v454_v21 }
 0x5d3   :  { %v784_v23 = vsel %vm275_vm3, %v2907_v22, 0.0  ;;  %2729 = vmatprep.subr.mxu1 %v2956_v34 }
 0x5d4   :  { %785 = vadd.xlane.f32.xlu0 %v784_v23 }
 0x5d5   :  { %v790_v37 = vpop.permute.xlu1 %789 }
 0x5db   :  { %v2909_v24 = vpop.eup %2908 }
 0x5dc   :  { %v448_v25 = vsel %vm275_vm3, %v2909_v24, 0.0 }
 0x5dd   :  { %449 = vadd.xlane.f32.xlu0 %v448_v25 }
 0x5f3   :  { %623 = vrot.lane.b32.xlu0 %v3105_v39, %s2961_s0  ;;  %v873_v39 = vld [vmem:[%s3465_s5 + $0x18] sm:$0xff] }
 0x5f4   :  { %2744 = vmatprep.subr.mxu0 %v873_v39 }
 0x5f5   :  { %2745 = vmatpush3.msra.mxu0 %v873_v39 }
 0x5f6   :  { %2746 = vmatprep.subr.mxu0 %v872_v40 }
 0x5f7   :  { %2747 = vmatpush3.msra.mxu0 %v872_v40 }
 0x5f8   :  { %2748 = vmatprep.subr.mxu0 %v871_v41 }
 0x5f9   :  { %2749 = vmatpush3.msra.mxu0 %v871_v41 }
 0x5fa   :  { %2750 = vmatprep.subr.mxu0 %v870_v42 }
 0x5fb   :  { %2751 = vmatpush3.msra.mxu0 %v870_v42 }
 0x65d   :  { %v786_v26 = vpop.xlane.xlu0 %785 }
 0x666   :  { %v450_v27 = vpop.xlane.xlu0 %449 }
 0x667   :  { %2910 = vrcp.f32 %v450_v27  ;;  %v1116_v27 = vld [vmem:[%s3470_s11 + $0x30] sm:$0xff] }
 0x668   :  { %2912 = vrcp.f32 %v620_v20 }
 0x669   :  { %2914 = vrcp.f32 %v786_v26  ;;  %v1117_v26 = vld [vmem:[%s3470_s11 + $0x38] sm:$0xff] }
 0x66a   :  { %v624_v32 = vpop.permute.xlu0 %623  ;;  %2766 = vmatprep.subr.mxu0 %v1117_v26 }
 0x674   :  { %v2911_v28 = vpop.eup %2910 }
 0x675   :  { %v452_v29 = vmul.f32 %v2911_v28, %v2909_v24  ;;  %v2913_v30 = vpop.eup %2912  ;;  %v1115_v28 = vld [vmem:[%s3470_s11 + $0x28] sm:$0xff] }
 0x676   :  { %v622_v35 = vmul.f32 %v2913_v30, %v2905_v12  ;;  %v2915_v36 = vpop.eup %2914  ;;  %v1113_v30 = vld [vmem:[%s3470_s11 + $0x18] sm:$0xff] }
 0x677   :  { %2722 = vmatmul.mubr.msk.f32.vlgmr.msra.gmra.mxu1 %vm275_vm3, %v452_v29  ;;  %v788_v38 = vmul.f32 %v2915_v36, %v2907_v22  ;;  %v1114_v29 = vld [vmem:[%s3470_s11 + $0x20] sm:$0xff] }
 0x678   :  { %2730 = vmatpush3.msra.mxu1 %v624_v32  ;;  %2731 = vmatprep.mubr.msk.f32.mxu1 %vm2957_vm1, %v2956_v34  ;;  %v1112_v32 = vld [vmem:[%s3470_s11 + $0x10] sm:$0xff]  ;;  %v1110_v36 = vld [vmem:[%s3470_s11] sm:$0xff] }
 0x679   :  { %2739 = vmatprep.subr.mxu1 %v2956_v34 }
 0x67b   :  { %2732 = vmatmul.mubr.msk.f32.vlgmr.msra.gmra.mxu1 %vm275_vm3, %v622_v35  ;;  %v1111_v35 = vld [vmem:[%s3470_s11 + $0x8] sm:$0xff] }
 0x67c   :  { %2740 = vmatpush3.msra.mxu1 %v790_v37  ;;  %2741 = vmatprep.mubr.msk.f32.mxu1 %vm2957_vm1, %v2956_v34  ;;  %v2532_v37 = vld [vmem:[%s3471_s10] ss:$0 sm:$0xff] }
 0x67f   :  { %2742 = vmatmul.mubr.msk.f32.vlgmr.msra.gmra.mxu1 %vm275_vm3, %v788_v38 }
 0x737   :  { %v525_v43 = vpop.f32.mrf.mxu1 }
 0x738   :  { %530 = vrot.lane.b32.xlu1 %v525_v43, %s2963_s26 }
 0x739   :  { %v2723_v44 = vpop.f32.mrf.mxu1 }
 0x73b   :  { %v695_v45 = vpop.f32.mrf.mxu1 }
 0x73d   :  { %v2733_v46 = vpop.f32.mrf.mxu1 }
 0x73f   :  { %v861_v47 = vpop.f32.mrf.mxu1 }
 0x740   :  { %866 = vrot.lane.b32.xlu1 %v861_v47, %s2963_s26 }
 0x741   :  { %v2743_v48 = vpop.f32.mrf.mxu1 }
 0x7aa   :  { %v531_v49 = vpop.permute.xlu1 %530 }
 0x7ab   :  { %v533_v50 = vsel %vm199_vm2, %v3144_v6, %v531_v49 }
 0x7ac   :  { %2752 = vmatprep.mubr.msk.f32.mxu0 %vm60_vm0, %v533_v50 }
 0x7b2   :  { %v867_v51 = vpop.permute.xlu1 %866 }
 0x7b3   :  { %v869_v52 = vsel %vm199_vm2, %v695_v45, %v867_v51 }
 0x7b4   :  { %2753 = vmatmul.mubr.msk.f32.vlgmr.msra.gmra.mxu0 %vm60_vm0, %v869_v52  ;;  %v2535_v52 = vld [vmem:[%s3472_s12] ss:$0 sm:$0xff] }
 0x7b5   :  { %2767 = vmatpush3.msra.mxu0 %v1117_v26  ;;  %v2545_v26 = vld [vmem:[%s3464_s4 + $0x1] ss:$0 sm:$0xff] }
 0x7b6   :  { %2768 = vmatprep.subr.mxu0 %v1116_v27 }
 0x7b7   :  { %2769 = vmatpush3.msra.mxu0 %v1116_v27 }
 0x7b8   :  { %2770 = vmatprep.subr.mxu0 %v1115_v28 }
 0x7b9   :  { %2771 = vmatpush3.msra.mxu0 %v1115_v28 }
 0x7ba   :  { %2772 = vmatprep.subr.mxu0 %v1114_v29 }
 0x7bb   :  { %2773 = vmatpush3.msra.mxu0 %v1114_v29 }
 0x7bc   :  { %2774 = vmatprep.subr.mxu0 %v1113_v30 }
 0x7bd   :  { %2775 = vmatpush3.msra.mxu0 %v1113_v30 }
 0x7be   :  { %2776 = vmatprep.subr.mxu0 %v1112_v32 }
 0x7bf   :  { %2777 = vmatpush3.msra.mxu0 %v1112_v32 }
 0x7c0   :  { %2778 = vmatprep.subr.mxu0 %v1111_v35 }
 0x7c1   :  { %2779 = vmatpush3.msra.mxu0 %v1111_v35 }
 0x7c2   :  { %2780 = vmatprep.subr.mxu0 %v1110_v36 }
 0x7c3   :  { %2781 = vmatpush3.msra.mxu0 %v1110_v36 }
 0x7c4   :  { %2806 = vmatprep.subr.mxu0 %v2956_v34 }
 0x874   :  { %v2754_v54 = vpop.f32.mrf.mxu0 }
 0x875   :  { %v959_v55 = vadd.f32 %v2754_v54, %v2527_v53 }
 0x876   :  { %v953_v56 = vpop.f32.mrf.mxu0 }
 0x877   :  { %v954_v57 = vadd.f32 %v2527_v53, %v953_v56  ;;  %v963_v58 = vadd.f32 %v959_v55, %v3086_v33 }
 0x879   :  { %v969_v59 = vsel %vm60_vm0, %v963_v58, 0.0  ;;  %v962_v60 = vadd.f32 %v954_v57, %v3082_v31  ;;  %v1011_v31 = vld [vmem:[%s3467_s9 + $0x18] sm:$0xff] }
 0x87a   :  { %970 = vadd.xlane.f32.xlu1 %v969_v59  ;;  %2755 = vmatprep.subr.mxu1 %v1011_v31 }
 0x87b   :  { %v966_v61 = vsel %vm60_vm0, %v962_v60, 0.0  ;;  %2756 = vmatpush3.msra.mxu1 %v1011_v31  ;;  %v2542_v31 = vld [vmem:[%s3483_s30 + $0x30] sm:$0xff] }
 0x87c   :  { %967 = vadd.xlane.f32.xlu0 %v966_v61  ;;  %2757 = vmatprep.subr.mxu1 %v1010_v7 }
 0x87d   :  { %2758 = vmatpush3.msra.mxu1 %v1010_v7  ;;  %v2541_v7 = vld [vmem:[%s3483_s30 + $0x28] sm:$0xff] }
 0x87e   :  { %2759 = vmatprep.subr.mxu1 %v1009_v8 }
 0x87f   :  { %2760 = vmatpush3.msra.mxu1 %v1009_v8  ;;  %v2540_v8 = vld [vmem:[%s3483_s30 + $0x20] sm:$0xff] }
 0x880   :  { %2761 = vmatprep.subr.mxu1 %v1008_v9 }
 0x881   :  { %2762 = vmatpush3.msra.mxu1 %v1008_v9 }
 0x903   :  { %v971_v62 = vpop.xlane.xlu1 %970 }
 0x904   :  { %v973_v63 = vmul.f32 0.03125, %v971_v62 }
 0x905   :  { %v968_v0 = vpop.xlane.xlu0 %967 }
 0x906   :  { %v972_v1 = vmul.f32 0.03125, %v968_v0  ;;  %v975_v2 = vsub.f32 %v963_v58, %v973_v63 }
 0x908   :  { %v974_v3 = vsub.f32 %v962_v60, %v972_v1  ;;  %v977_v6 = vmul.f32 %v975_v2, %v975_v2 }
 0x90a   :  { %v976_v4 = vmul.f32 %v974_v3, %v974_v3  ;;  %v981_v33 = vsel %vm60_vm0, %v977_v6, 0.0 }
 0x90c   :  { %v978_v5 = vsel %vm60_vm0, %v976_v4, 0.0 }
 0x90d   :  { %979 = vadd.xlane.f32.xlu0 %v978_v5 }
 0x911   :  { %982 = vadd.xlane.f32.xlu0 %v981_v33  ;;  %v2543_v33 = vld [vmem:[%s3483_s30 + $0x38] sm:$0xff] }
 0x912   :  { %2785 = vmatprep.subr.mxu1 %v2543_v33 }
 0x996   :  { %v980_v10 = vpop.xlane.xlu0 %979 }
 0x997   :  { %v984_v11 = vmul.f32 0.03125, %v980_v10 }
 0x999   :  { %v986_v12 = vadd.f32 1e-12, %v984_v11 }
 0x99a   :  { %v983_v13 = vpop.xlane.xlu0 %982 }
 0x99b   :  { %2916 = vrsqrt.f32 %v986_v12  ;;  %v985_v14 = vmul.f32 0.03125, %v983_v13 }
 0x99d   :  { %v987_v15 = vadd.f32 1e-12, %v985_v14 }
 0x99f   :  { %2918 = vrsqrt.f32 %v987_v15 }
 0x9a8   :  { %v2917_v16 = vpop.eup %2916 }
 0x9a9   :  { %v990_v18 = vmul.f32 %v2917_v16, %v974_v3  ;;  %v2538_v16 = vld [vmem:[%s3473_s13] ss:$0 sm:$0xff] }
 0x9ab   :  { %v998_v20 = vmul.f32 %v2530_v17, %v990_v18 }
 0x9ac   :  { %v2919_v21 = vpop.eup %2918 }
 0x9ad   :  { %v991_v22 = vmul.f32 %v2919_v21, %v975_v2  ;;  %v1006_v23 = vadd.f32 %v2531_v19, %v998_v20  ;;  %v2539_v21 = vld [vmem:[%s3474_s14] ss:$0 sm:$0xff] }
 0x9af   :  { %v999_v24 = vmul.f32 %v2530_v17, %v991_v22  ;;  %2763 = vmatprep.mubr.msk.f32.mxu1 %vm60_vm0, %v1006_v23 }
 0x9b1   :  { %v1007_v25 = vadd.f32 %v2531_v19, %v999_v24 }
 0x9b3   :  { %2764 = vmatmul.mubr.msk.f32.vlgmr.msra.gmra.mxu1 %vm60_vm0, %v1007_v25 }
 0x9b4   :  { %2786 = vmatpush3.msra.mxu1 %v2543_v33 }
 0x9b5   :  { %2787 = vmatprep.subr.mxu1 %v2542_v31 }
 0x9b6   :  { %2788 = vmatpush3.msra.mxu1 %v2542_v31 }
 0x9b7   :  { %2789 = vmatprep.subr.mxu1 %v2541_v7 }
 0x9b8   :  { %2790 = vmatpush3.msra.mxu1 %v2541_v7 }
 0x9b9   :  { %2791 = vmatprep.subr.mxu1 %v2540_v8 }
 0x9ba   :  { %2792 = vmatpush3.msra.mxu1 %v2540_v8 }
 0x9bb   :  { %2796 = vmatprep.subr.mxu1 %v2956_v34 }
 0xa73   :  { %v2765_v38 = vpop.f32.mrf.mxu1 }
 0xa74   :  { %v1097_v39 = vadd.f32 %v2765_v38, %v2532_v37 }
 0xa75   :  { %v1091_v40 = vpop.f32.mrf.mxu1 }
 0xa76   :  { %v1103_v41 = vmul.f32 0.70710677, %v1097_v39  ;;  %v1092_v42 = vadd.f32 %v2532_v37, %v1091_v40  ;;  %v1101_v49 = vmul.f32 0.5, %v1097_v39 }
 0xa78   :  { %2920 = verf.f32 %v1103_v41  ;;  %v1102_v43 = vmul.f32 0.70710677, %v1092_v42  ;;  %v1100_v47 = vmul.f32 0.5, %v1092_v42 }
 0xa7a   :  { %2922 = verf.f32 %v1102_v43 }
 0xa85   :  { %v2921_v44 = vpop.eup %2920 }
 0xa86   :  { %v1107_v46 = vadd.f32 1.0, %v2921_v44 }
 0xa87   :  { %v2923_v45 = vpop.eup %2922 }
 0xa88   :  { %v1106_v48 = vadd.f32 1.0, %v2923_v45  ;;  %v1109_v51 = vmul.f32 %v1107_v46, %v1101_v49 }
 0xa8a   :  { %v1108_v50 = vmul.f32 %v1106_v48, %v1100_v47 }
 0xa8c   :  { %2782 = vmatprep.mubr.msk.f32.mxu0 %vm1125_vm4, %v1108_v50 }
 0xa8d   :  { %2783 = vmatmul.mubr.msk.f32.vlgmr.msra.gmra.mxu0 %vm1125_vm4, %v1109_v51 }
 0xa8e   :  { %2808 = vmatprep.mubr.msk.f32.mxu0 %vm2957_vm1, %v2956_v34 }
 0xb4d   :  { %v2784_v53 = vpop.f32.mrf.mxu0 }
 0xb4e   :  { %v1204_v54 = vadd.f32 %v2784_v53, %v2535_v52 }
 0xb4f   :  { %v1198_v55 = vpop.f32.mrf.mxu0 }
 0xb50   :  { %v1199_v56 = vadd.f32 %v2535_v52, %v1198_v55  ;;  %v1208_v57 = vadd.f32 %v1204_v54, %v1007_v25 }
 0xb52   :  { %v1214_v58 = vsel %vm60_vm0, %v1208_v57, 0.0  ;;  %v1207_v59 = vadd.f32 %v1199_v56, %v1006_v23 }
 0xb53   :  { %1215 = vadd.xlane.f32.xlu1 %v1214_v58 }
 0xb54   :  { %v1211_v60 = vsel %vm60_vm0, %v1207_v59, 0.0 }
 0xb55   :  { %1212 = vadd.xlane.f32.xlu0 %v1211_v60 }
 0xbdc   :  { %v1216_v61 = vpop.xlane.xlu1 %1215 }
 0xbdd   :  { %v1218_v62 = vmul.f32 0.03125, %v1216_v61 }
 0xbde   :  { %v1213_v63 = vpop.xlane.xlu0 %1212 }
 0xbdf   :  { %v1220_v0 = vsub.f32 %v1208_v57, %v1218_v62  ;;  %v1217_v1 = vmul.f32 0.03125, %v1213_v63 }
 0xbe1   :  { %v1219_v2 = vsub.f32 %v1207_v59, %v1217_v1  ;;  %v1222_v3 = vmul.f32 %v1220_v0, %v1220_v0 }
 0xbe3   :  { %v1226_v4 = vsel %vm60_vm0, %v1222_v3, 0.0  ;;  %v1221_v5 = vmul.f32 %v1219_v2, %v1219_v2 }
 0xbe4   :  { %1227 = vadd.xlane.f32.xlu1 %v1226_v4 }
 0xbe5   :  { %v1223_v6 = vsel %vm60_vm0, %v1221_v5, 0.0 }
 0xbe6   :  { %1224 = vadd.xlane.f32.xlu0 %v1223_v6 }
 0xc6d   :  { %v1228_v9 = vpop.xlane.xlu1 %1227 }
 0xc6e   :  { %v1230_v10 = vmul.f32 0.03125, %v1228_v9 }
 0xc6f   :  { %v1225_v11 = vpop.xlane.xlu0 %1224 }
 0xc70   :  { %v1232_v12 = vadd.f32 1e-12, %v1230_v10  ;;  %v1229_v13 = vmul.f32 0.03125, %v1225_v11 }
 0xc72   :  { %2924 = vrsqrt.f32 %v1232_v12  ;;  %v1231_v14 = vadd.f32 1e-12, %v1229_v13 }
 0xc74   :  { %2926 = vrsqrt.f32 %v1231_v14 }
 0xc7f   :  { %v2925_v15 = vpop.eup %2924 }
 0xc80   :  { %v1236_v17 = vmul.f32 %v2925_v15, %v1220_v0 }
 0xc81   :  { %v2927_v18 = vpop.eup %2926 }
 0xc82   :  { %v1235_v19 = vmul.f32 %v2927_v18, %v1219_v2  ;;  %v1244_v20 = vmul.f32 %v2538_v16, %v1236_v17 }
 0xc84   :  { %v1243_v22 = vmul.f32 %v2538_v16, %v1235_v19  ;;  %v3273_v24 = vadd.f32 %v2539_v21, %v1244_v20 }
 0xc86   :  { %v3271_v23 = vadd.f32 %v2539_v21, %v1243_v22 }
 0xc88   :  { %2793 = vmatprep.mubr.msk.f32.mxu1 %vm60_vm0, %v3271_v23 }
 0xc89   :  { %2794 = vmatmul.mubr.msk.f32.vlgmr.msra.gmra.mxu1 %vm60_vm0, %v3273_v24 }
 0xc8a   :  { %2798 = vmatprep.mubr.msk.f32.mxu1 %vm2957_vm1, %v2956_v34 }
 0xd49   :  { %v2795_v25 = vpop.f32.mrf.mxu1 }
 0xd4a   :  { %v3290_v29 = vadd.f32 %v2795_v25, %v2545_v26 }
 0xd4b   :  { %v1338_v27 = vpop.f32.mrf.mxu1 }
 0xd4c   :  { %v3284_v28 = vadd.f32 %v2545_v26, %v1338_v27  ;;  %v2563_v27 = vld [vmem:[%s3465_s5 + $0x38] sm:$0xff] }
 0xd4e   :  { %1514 = vrot.lane.b32.xlu1 %v3284_v28, %s2959_s28  ;;  %1348 = vrot.lane.b32.xlu0 %v3284_v28, %s2958_s27 }
 0xd52   :  { %1512 = vrot.lane.b32.xlu1 %v3284_v28, %s2960_s29  ;;  %1850 = vrot.lane.b32.xlu0 %v3290_v29, %s2959_s28 }
 0xd56   :  { %1684 = vrot.lane.b32.xlu1 %v3290_v29, %s2958_s27 }
 0xd5a   :  { %1848 = vrot.lane.b32.xlu1 %v3290_v29, %s2960_s29 }
 0xdc0   :  { %v1515_v30 = vpop.permute.xlu1 %1514  ;;  %v1349_v32 = vpop.permute.xlu0 %1348 }
 0xdc1   :  { %2797 = vmatpush3.xpose.msk.msra.mxu1 %vm199_vm2, %v1349_v32  ;;  %2807 = vmatpush3.xpose.msk.msra.mxu0 %vm199_vm2, %v1515_v30 }
 0xdc2   :  { %2816 = vmatprep.subr.mxu0 %v2956_v34  ;;  %2801 = vmatprep.subr.mxu1 %v2956_v34 }
 0xdc4   :  { %v1513_v35 = vpop.permute.xlu1 %1512  ;;  %2799 = vmatmul.mubr.msk.f32.vlgmr.msra.gmra.mxu1 %vm199_vm2, %v3284_v28  ;;  %v1851_v37 = vpop.permute.xlu0 %1850 }
 0xdc5   :  { %2809 = vmatmul.mubr.msk.f32.vlgmr.msra.gmra.mxu0 %vm199_vm2, %v1513_v35  ;;  %2803 = vmatprep.mubr.msk.f32.mxu1 %vm2957_vm1, %v2956_v34 }
 0xdc6   :  { %2818 = vmatprep.mubr.msk.f32.mxu0 %vm2957_vm1, %v2956_v34 }
 0xdc8   :  { %v1685_v36 = vpop.permute.xlu1 %1684 }
 0xdc9   :  { %2817 = vmatpush3.xpose.msk.msra.mxu0 %vm199_vm2, %v1685_v36 }
 0xdca   :  { %2826 = vmatprep.subr.mxu0 %v2956_v34 }
 0xdcc   :  { %2819 = vmatmul.mubr.msk.f32.vlgmr.msra.gmra.mxu0 %vm199_vm2, %v3290_v29  ;;  %v1849_v38 = vpop.permute.xlu1 %1848 }
 0xdcd   :  { %2827 = vmatpush3.xpose.msk.msra.mxu0 %vm199_vm2, %v1851_v37  ;;  %2828 = vmatprep.mubr.msk.f32.mxu0 %vm2957_vm1, %v2956_v34 }
 0xdce   :  { %2836 = vmatprep.subr.mxu0 %v2563_v27 }
 0xdd0   :  { %2829 = vmatmul.mubr.msk.f32.vlgmr.msra.gmra.mxu0 %vm199_vm2, %v1849_v38 }
 0xdd1   :  { %2837 = vmatpush3.msra.mxu0 %v2563_v27 }
 0xe84   :  { %v1420_v39 = vpop.f32.mrf.mxu1 }
 0xe85   :  { %v1424_v40 = vmul.f32 0.25, %v1420_v39  ;;  %v1586_v41 = vpop.f32.mrf.mxu0 }
 0xe86   :  { %v1590_v42 = vmul.f32 0.25, %v1586_v41  ;;  %v2800_v43 = vpop.f32.mrf.mxu1 }
 0xe87   :  { %v2810_v44 = vpop.f32.mrf.mxu0  ;;  %v1425_v45 = vsel %vm275_vm3, %v1424_v40, -inf }
 0xe88   :  { %1426 = vmax.xlane.f32.xlu0 %v1425_v45  ;;  %v1591_v46 = vsel %vm275_vm3, %v1590_v42, -inf  ;;  %v2565_v45 = vld [vmem:[%s3466_s6 + $0x1] ss:$0 sm:$0xff] }
 0xe89   :  { %1592 = vmax.xlane.f32.xlu1 %v1591_v46 }
 0xe8c   :  { %v1756_v47 = vpop.f32.mrf.mxu0 }
 0xe8d   :  { %v1760_v48 = vmul.f32 0.25, %v1756_v47 }
 0xe8e   :  { %v2820_v49 = vpop.f32.mrf.mxu0 }
 0xe8f   :  { %v1761_v50 = vsel %vm275_vm3, %v1760_v48, -inf }
 0xe90   :  { %1762 = vmax.xlane.f32.xlu0 %v1761_v50  ;;  %v1922_v51 = vpop.f32.mrf.mxu0 }
 0xe91   :  { %v1926_v52 = vmul.f32 0.25, %v1922_v51 }
 0xe92   :  { %v2830_v53 = vpop.f32.mrf.mxu0 }
 0xe93   :  { %v1927_v54 = vsel %vm275_vm3, %v1926_v52, -inf }
 0xe94   :  { %1928 = vmax.xlane.f32.xlu0 %v1927_v54 }
 0xf11   :  { %v1427_v55 = vpop.xlane.xlu0 %1426 }
 0xf12   :  { %v1428_v56 = vsub.f32 %v1424_v40, %v1427_v55  ;;  %v1593_v57 = vpop.xlane.xlu1 %1592 }
 0xf13   :  { %v1594_v58 = vsub.f32 %v1590_v42, %v1593_v57 }
 0xf14   :  { %v1429_v59 = vmul.f32 1.442695, %v1428_v56 }
 0xf15   :  { %v1595_v60 = vmul.f32 1.442695, %v1594_v58 }
 0xf16   :  { %2928 = vpow2.f32 %v1429_v59 }
 0xf17   :  { %2930 = vpow2.f32 %v1595_v60 }
 0xf19   :  { %v1763_v61 = vpop.xlane.xlu0 %1762 }
 0xf1a   :  { %v1764_v62 = vsub.f32 %v1760_v48, %v1763_v61 }
 0xf1c   :  { %v1765_v63 = vmul.f32 1.442695, %v1764_v62 }
 0xf1d   :  { %v1929_v6 = vpop.xlane.xlu0 %1928 }
 0xf1e   :  { %2932 = vpow2.f32 %v1765_v63  ;;  %v1930_v33 = vsub.f32 %v1926_v52, %v1929_v6  ;;  %v2574_v63 = vld [vmem:[%s3467_s9 + $0x30] sm:$0xff] }
 0xf20   :  { %v1931_v31 = vmul.f32 1.442695, %v1930_v33 }
 0xf22   :  { %2934 = vpow2.f32 %v1931_v31 }
 0xf23   :  { %v2929_v0 = vpop.eup %2928 }
 0xf24   :  { %v2931_v1 = vpop.eup %2930  ;;  %v1431_v2 = vsel %vm275_vm3, %v2929_v0, 0.0 }
 0xf25   :  { %1432 = vadd.xlane.f32.xlu0 %v1431_v2  ;;  %v1597_v3 = vsel %vm275_vm3, %v2931_v1, 0.0 }
 0xf26   :  { %1598 = vadd.xlane.f32.xlu1 %v1597_v3 }
 0xf2b   :  { %v2933_v4 = vpop.eup %2932 }
 0xf2c   :  { %v1767_v5 = vsel %vm275_vm3, %v2933_v4, 0.0 }
 0xf2d   :  { %1768 = vadd.xlane.f32.xlu0 %v1767_v5 }
 0xf2f   :  { %v2935_v7 = vpop.eup %2934 }
 0xf30   :  { %v1933_v8 = vsel %vm275_vm3, %v2935_v7, 0.0 }
 0xf37   :  { %1602 = vrot.lane.b32.xlu1 %v3284_v28, %s2962_s18 }
 0xf3b   :  { %1772 = vrot.lane.b32.xlu1 %v3290_v29, %s2961_s0 }
 0xf43   :  { %1436 = vrot.lane.b32.xlu0 %v3284_v28, %s2961_s0  ;;  %v2562_v28 = vld [vmem:[%s3465_s5 + $0x30] sm:$0xff] }
 0xf44   :  { %2838 = vmatprep.subr.mxu0 %v2562_v28 }
 0xf45   :  { %2839 = vmatpush3.msra.mxu0 %v2562_v28 }
 0xf5f   :  { %1934 = vadd.xlane.f32.xlu1 %v1933_v8 }
 0xf70   :  { %1938 = vrot.lane.b32.xlu1 %v3290_v29, %s2962_s18  ;;  %v2560_v29 = vld [vmem:[%s3465_s5 + $0x20] sm:$0xff] }
 0xfae   :  { %v1433_v9 = vpop.xlane.xlu0 %1432 }
 0xfaf   :  { %2936 = vrcp.f32 %v1433_v9  ;;  %v1599_v10 = vpop.xlane.xlu1 %1598  ;;  %v2571_v9 = vld [vmem:[%s3469_s8 + $0x1] ss:$0 sm:$0xff] }
 0xfb0   :  { %2938 = vrcp.f32 %v1599_v10 }
 0xfb3   :  { %v1603_v14 = vpop.permute.xlu1 %1602 }
 0xfb6   :  { %v1769_v11 = vpop.xlane.xlu0 %1768 }
 0xfb7   :  { %2940 = vrcp.f32 %v1769_v11  ;;  %v1773_v18 = vpop.permute.xlu1 %1772 }
 0xfba   :  { %v1437_v12 = vpop.permute.xlu0 %1436 }
 0xfbb   :  { %2802 = vmatpush3.msra.mxu1 %v1437_v12 }
 0xfbc   :  { %v2937_v13 = vpop.eup %2936  ;;  %2811 = vmatprep.subr.mxu1 %v2956_v34 }
 0xfbd   :  { %v1435_v15 = vmul.f32 %v2937_v13, %v2929_v0  ;;  %v2939_v16 = vpop.eup %2938  ;;  %v2573_v0 = vld [vmem:[%s3467_s9 + $0x28] sm:$0xff] }
 0xfbe   :  { %v1601_v17 = vmul.f32 %v2939_v16, %v2931_v1  ;;  %v2572_v1 = vld [vmem:[%s3467_s9 + $0x20] sm:$0xff]  ;;  %v2587_v16 = vld [vmem:[%s3470_s11 + $0x78] sm:$0xff] }
 0xfbf   :  { %2804 = vmatmul.mubr.msk.f32.vlgmr.msra.gmra.mxu1 %vm275_vm3, %v1435_v15 }
 0xfc0   :  { %2812 = vmatpush3.msra.mxu1 %v1603_v14  ;;  %2813 = vmatprep.mubr.msk.f32.mxu1 %vm2957_vm1, %v2956_v34 }
 0xfc1   :  { %2821 = vmatprep.subr.mxu1 %v2956_v34 }
 0xfc3   :  { %2814 = vmatmul.mubr.msk.f32.vlgmr.msra.gmra.mxu1 %vm275_vm3, %v1601_v17  ;;  %v2586_v17 = vld [vmem:[%s3470_s11 + $0x70] sm:$0xff] }
 0xfc4   :  { %v2941_v19 = vpop.eup %2940  ;;  %2822 = vmatpush3.msra.mxu1 %v1773_v18  ;;  %2823 = vmatprep.mubr.msk.f32.mxu1 %vm2957_vm1, %v2956_v34  ;;  %v2585_v18 = vld [vmem:[%s3470_s11 + $0x68] sm:$0xff] }
 0xfc5   :  { %v1771_v20 = vmul.f32 %v2941_v19, %v2933_v4  ;;  %2831 = vmatprep.subr.mxu1 %v2956_v34  ;;  %v2584_v19 = vld [vmem:[%s3470_s11 + $0x60] sm:$0xff] }
 0xfc7   :  { %2824 = vmatmul.mubr.msk.f32.vlgmr.msra.gmra.mxu1 %vm275_vm3, %v1771_v20  ;;  %v2583_v20 = vld [vmem:[%s3470_s11 + $0x58] sm:$0xff] }
 0xfc8   :  { %2833 = vmatprep.mubr.msk.f32.mxu1 %vm2957_vm1, %v2956_v34  ;;  %v2561_v34 = vld [vmem:[%s3465_s5 + $0x28] sm:$0xff] }
 0xfc9   :  { %2840 = vmatprep.subr.mxu0 %v2561_v34 }
 0xfca   :  { %2841 = vmatpush3.msra.mxu0 %v2561_v34 }
 0xfcb   :  { %2842 = vmatprep.subr.mxu0 %v2560_v29 }
 0xfcc   :  { %2843 = vmatpush3.msra.mxu0 %v2560_v29 }
 0xfcd   :  { %2858 = vmatprep.subr.mxu0 %v2587_v16 }
 0xfe8   :  { %v1935_v21 = vpop.xlane.xlu1 %1934 }
 0xfe9   :  { %2942 = vrcp.f32 %v1935_v21  ;;  %v2582_v21 = vld [vmem:[%s3470_s11 + $0x50] sm:$0xff] }
 0xfec   :  { %v1939_v22 = vpop.permute.xlu1 %1938 }
 0xfed   :  { %2832 = vmatpush3.msra.mxu1 %v1939_v22  ;;  %v2581_v22 = vld [vmem:[%s3470_s11 + $0x48] sm:$0xff] }
 0xff6   :  { %v2943_v25 = vpop.eup %2942 }
 0xff7   :  { %v1937_v26 = vmul.f32 %v2943_v25, %v2935_v7  ;;  %v2570_v7 = vld [vmem:[%s3468_s7 + $0x1] ss:$0 sm:$0xff] }
 0xff8   :  { %v2580_v25 = vld [vmem:[%s3470_s11 + $0x40] sm:$0xff] }
 0xff9   :  { %2834 = vmatmul.mubr.msk.f32.vlgmr.msra.gmra.mxu1 %vm275_vm3, %v1937_v26  ;;  %v2577_v26 = vld [vmem:[%s3471_s10 + $0x1] ss:$0 sm:$0xff] }
0x107f   :  { %v1508_v30 = vpop.f32.mrf.mxu1 }
0x1081   :  { %v2805_v32 = vpop.f32.mrf.mxu1 }
0x1083   :  { %v1674_v35 = vpop.f32.mrf.mxu1 }
0x1084   :  { %1679 = vrot.lane.b32.xlu0 %v1674_v35, %s2963_s26 }
0x1085   :  { %v2815_v36 = vpop.f32.mrf.mxu1 }
0x1087   :  { %v1844_v37 = vpop.f32.mrf.mxu1 }
0x1089   :  { %v2825_v38 = vpop.f32.mrf.mxu1 }
0x10b9   :  { %v2010_v39 = vpop.f32.mrf.mxu1 }
0x10ba   :  { %2015 = vrot.lane.b32.xlu1 %v2010_v39, %s2963_s26 }
0x10bb   :  { %v2835_v40 = vpop.f32.mrf.mxu1 }
0x10f6   :  { %v1680_v41 = vpop.permute.xlu0 %1679 }
0x10f7   :  { %v1682_v42 = vsel %vm199_vm2, %v1508_v30, %v1680_v41 }
0x10f8   :  { %2844 = vmatprep.mubr.msk.f32.mxu0 %vm60_vm0, %v1682_v42 }
0x112c   :  { %v2016_v43 = vpop.permute.xlu1 %2015 }
0x112d   :  { %v2018_v44 = vsel %vm199_vm2, %v1844_v37, %v2016_v43  ;;  %v2589_v43 = vld [vmem:[%s3472_s12 + $0x1] ss:$0 sm:$0xff] }
0x112e   :  { %2845 = vmatmul.mubr.msk.f32.vlgmr.msra.gmra.mxu0 %vm60_vm0, %v2018_v44 }
0x112f   :  { %2859 = vmatpush3.msra.mxu0 %v2587_v16 }
0x1130   :  { %2860 = vmatprep.subr.mxu0 %v2586_v17 }
0x1131   :  { %2861 = vmatpush3.msra.mxu0 %v2586_v17 }
0x1132   :  { %2862 = vmatprep.subr.mxu0 %v2585_v18 }
0x1133   :  { %2863 = vmatpush3.msra.mxu0 %v2585_v18 }
0x1134   :  { %2864 = vmatprep.subr.mxu0 %v2584_v19 }
0x1135   :  { %2865 = vmatpush3.msra.mxu0 %v2584_v19 }
0x1136   :  { %2866 = vmatprep.subr.mxu0 %v2583_v20 }
0x1137   :  { %2867 = vmatpush3.msra.mxu0 %v2583_v20 }
0x1138   :  { %2868 = vmatprep.subr.mxu0 %v2582_v21 }
0x1139   :  { %2869 = vmatpush3.msra.mxu0 %v2582_v21 }
0x113a   :  { %2870 = vmatprep.subr.mxu0 %v2581_v22 }
0x113b   :  { %2871 = vmatpush3.msra.mxu0 %v2581_v22 }
0x113c   :  { %2872 = vmatprep.subr.mxu0 %v2580_v25 }
0x113d   :  { %2873 = vmatpush3.msra.mxu0 %v2580_v25 }
0x11ee   :  { %v2846_v46 = vpop.f32.mrf.mxu0 }
0x11ef   :  { %v2110_v47 = vadd.f32 %v2846_v46, %v2565_v45 }
0x11f0   :  { %v2104_v48 = vpop.f32.mrf.mxu0 }
0x11f1   :  { %v2105_v49 = vadd.f32 %v2565_v45, %v2104_v48  ;;  %v2114_v50 = vadd.f32 %v2110_v47, %v3273_v24 }
0x11f3   :  { %v2122_v51 = vsel %vm60_vm0, %v2114_v50, 0.0  ;;  %v2113_v52 = vadd.f32 %v2105_v49, %v3271_v23  ;;  %v2575_v23 = vld [vmem:[%s3467_s9 + $0x38] sm:$0xff] }
0x11f4   :  { %2123 = vadd.xlane.f32.xlu1 %v2122_v51  ;;  %2847 = vmatprep.subr.mxu1 %v2575_v23 }
0x11f5   :  { %v2119_v53 = vsel %vm60_vm0, %v2113_v52, 0.0  ;;  %2848 = vmatpush3.msra.mxu1 %v2575_v23  ;;  %v2412_v23 = vld [vmem:[%s3475_s15 + $0x8] sm:$0xff] }
0x11f6   :  { %2120 = vadd.xlane.f32.xlu0 %v2119_v53  ;;  %2849 = vmatprep.subr.mxu1 %v2574_v63 }
0x11f7   :  { %2850 = vmatpush3.msra.mxu1 %v2574_v63  ;;  %v2411_v63 = vld [vmem:[%s3475_s15] sm:$0xff] }
0x11f8   :  { %2851 = vmatprep.subr.mxu1 %v2573_v0 }
0x11f9   :  { %2852 = vmatpush3.msra.mxu1 %v2573_v0 }
0x11fa   :  { %2853 = vmatprep.subr.mxu1 %v2572_v1 }
0x11fb   :  { %2854 = vmatpush3.msra.mxu1 %v2572_v1 }
0x127d   :  { %v2124_v54 = vpop.xlane.xlu1 %2123 }
0x127e   :  { %v2126_v55 = vmul.f32 0.03125, %v2124_v54 }
0x127f   :  { %v2121_v56 = vpop.xlane.xlu0 %2120 }
0x1280   :  { %v2125_v57 = vmul.f32 0.03125, %v2121_v56  ;;  %v2128_v58 = vsub.f32 %v2114_v50, %v2126_v55 }
0x1282   :  { %v2127_v59 = vsub.f32 %v2113_v52, %v2125_v57  ;;  %v2130_v62 = vmul.f32 %v2128_v58, %v2128_v58 }
0x1284   :  { %v2129_v60 = vmul.f32 %v2127_v59, %v2127_v59  ;;  %v2134_v24 = vsel %vm60_vm0, %v2130_v62, 0.0  ;;  %v2414_v62 = vld [vmem:[%s3475_s15 + $0x18] sm:$0xff] }
0x1285   :  { %2877 = vmatprep.subr.mxu1 %v2414_v62 }
0x1286   :  { %v2131_v61 = vsel %vm60_vm0, %v2129_v60, 0.0 }
0x1287   :  { %2132 = vadd.xlane.f32.xlu0 %v2131_v61 }
0x128b   :  { %2135 = vadd.xlane.f32.xlu0 %v2134_v24  ;;  %v2413_v24 = vld [vmem:[%s3475_s15 + $0x10] sm:$0xff] }
0x1310   :  { %v2133_v2 = vpop.xlane.xlu0 %2132 }
0x1311   :  { %v2137_v3 = vmul.f32 0.03125, %v2133_v2 }
0x1313   :  { %v2139_v4 = vadd.f32 1e-12, %v2137_v3 }
0x1314   :  { %v2136_v5 = vpop.xlane.xlu0 %2135 }
0x1315   :  { %2944 = vrsqrt.f32 %v2139_v4  ;;  %v2138_v6 = vmul.f32 0.03125, %v2136_v5 }
0x1317   :  { %v2140_v33 = vadd.f32 1e-12, %v2138_v6 }
0x1319   :  { %2946 = vrsqrt.f32 %v2140_v33  ;;  %v2594_v33 = vld [vmem:[%s3473_s13 + $0x1] ss:$0 sm:$0xff] }
0x1322   :  { %v2945_v31 = vpop.eup %2944 }
0x1323   :  { %v2143_v8 = vmul.f32 %v2945_v31, %v2127_v59 }
0x1325   :  { %v2151_v10 = vmul.f32 %v2570_v7, %v2143_v8 }
0x1326   :  { %v2947_v11 = vpop.eup %2946 }
0x1327   :  { %v2144_v12 = vmul.f32 %v2947_v11, %v2128_v58  ;;  %v2159_v13 = vadd.f32 %v2571_v9, %v2151_v10  ;;  %v2595_v10 = vld [vmem:[%s3474_s14 + $0x1] ss:$0 sm:$0xff] }
0x1329   :  { %v2152_v14 = vmul.f32 %v2570_v7, %v2144_v12  ;;  %2855 = vmatprep.mubr.msk.f32.mxu1 %vm60_vm0, %v2159_v13 }
0x132b   :  { %v2160_v15 = vadd.f32 %v2571_v9, %v2152_v14  ;;  %v2596_v14 = vld [vmem:[%s3476_s16] ss:$0 sm:$0xff] }
0x132d   :  { %2856 = vmatmul.mubr.msk.f32.vlgmr.msra.gmra.mxu1 %vm60_vm0, %v2160_v15 }
0x132e   :  { %2878 = vmatpush3.msra.mxu1 %v2414_v62 }
0x132f   :  { %2879 = vmatprep.subr.mxu1 %v2413_v24 }
0x1330   :  { %2880 = vmatpush3.msra.mxu1 %v2413_v24 }
0x1331   :  { %2881 = vmatprep.subr.mxu1 %v2412_v23 }
0x1332   :  { %2882 = vmatpush3.msra.mxu1 %v2412_v23 }
0x1333   :  { %2883 = vmatprep.subr.mxu1 %v2411_v63 }
0x1334   :  { %2884 = vmatpush3.msra.mxu1 %v2411_v63 }
0x13ed   :  { %v2857_v27 = vpop.f32.mrf.mxu1 }
0x13ee   :  { %v2252_v28 = vadd.f32 %v2857_v27, %v2577_v26 }
0x13ef   :  { %v2246_v34 = vpop.f32.mrf.mxu1 }
0x13f0   :  { %v2258_v29 = vmul.f32 0.70710677, %v2252_v28  ;;  %v2247_v30 = vadd.f32 %v2577_v26, %v2246_v34  ;;  %v2256_v40 = vmul.f32 0.5, %v2252_v28 }
0x13f2   :  { %2948 = verf.f32 %v2258_v29  ;;  %v2257_v32 = vmul.f32 0.70710677, %v2247_v30  ;;  %v2255_v38 = vmul.f32 0.5, %v2247_v30 }
0x13f4   :  { %2950 = verf.f32 %v2257_v32 }
0x13ff   :  { %v2949_v35 = vpop.eup %2948 }
0x1400   :  { %v2262_v37 = vadd.f32 1.0, %v2949_v35 }
0x1401   :  { %v2951_v36 = vpop.eup %2950 }
0x1402   :  { %v2261_v39 = vadd.f32 1.0, %v2951_v36  ;;  %v2264_v42 = vmul.f32 %v2262_v37, %v2256_v40 }
0x1404   :  { %v2263_v41 = vmul.f32 %v2261_v39, %v2255_v38 }
0x1406   :  { %2874 = vmatprep.mubr.msk.f32.mxu0 %vm1125_vm4, %v2263_v41 }
0x1407   :  { %2875 = vmatmul.mubr.msk.f32.vlgmr.msra.gmra.mxu0 %vm1125_vm4, %v2264_v42 }
0x14c7   :  { %v2876_v44 = vpop.f32.mrf.mxu0 }
0x14c8   :  { %v2360_v45 = vadd.f32 %v2876_v44, %v2589_v43 }
0x14c9   :  { %v2354_v46 = vpop.f32.mrf.mxu0 }
0x14ca   :  { %v2355_v47 = vadd.f32 %v2589_v43, %v2354_v46  ;;  %v2364_v48 = vadd.f32 %v2360_v45, %v2160_v15 }
0x14cc   :  { %v2372_v49 = vsel %vm60_vm0, %v2364_v48, 0.0  ;;  %v2363_v50 = vadd.f32 %v2355_v47, %v2159_v13 }
0x14cd   :  { %2373 = vadd.xlane.f32.xlu1 %v2372_v49 }
0x14ce   :  { %v2369_v51 = vsel %vm60_vm0, %v2363_v50, 0.0 }
0x14cf   :  { %2370 = vadd.xlane.f32.xlu0 %v2369_v51 }
0x1556   :  { %v2374_v52 = vpop.xlane.xlu1 %2373 }
0x1557   :  { %v2376_v53 = vmul.f32 0.03125, %v2374_v52 }
0x1558   :  { %v2371_v54 = vpop.xlane.xlu0 %2370 }
0x1559   :  { %v2378_v55 = vsub.f32 %v2364_v48, %v2376_v53  ;;  %v2375_v56 = vmul.f32 0.03125, %v2371_v54 }
0x155b   :  { %v2377_v57 = vsub.f32 %v2363_v50, %v2375_v56  ;;  %v2380_v58 = vmul.f32 %v2378_v55, %v2378_v55 }
0x155d   :  { %v2384_v59 = vsel %vm60_vm0, %v2380_v58, 0.0  ;;  %v2379_v60 = vmul.f32 %v2377_v57, %v2377_v57 }
0x155e   :  { %2385 = vadd.xlane.f32.xlu1 %v2384_v59 }
0x155f   :  { %v2381_v61 = vsel %vm60_vm0, %v2379_v60, 0.0 }
0x1560   :  { %2382 = vadd.xlane.f32.xlu0 %v2381_v61 }
0x15e7   :  { %v2386_v0 = vpop.xlane.xlu1 %2385 }
0x15e8   :  { %v2388_v1 = vmul.f32 0.03125, %v2386_v0 }
0x15e9   :  { %v2383_v2 = vpop.xlane.xlu0 %2382 }
0x15ea   :  { %v2390_v3 = vadd.f32 1e-12, %v2388_v1  ;;  %v2387_v4 = vmul.f32 0.03125, %v2383_v2 }
0x15ec   :  { %2952 = vrsqrt.f32 %v2390_v3  ;;  %v2389_v5 = vadd.f32 1e-12, %v2387_v4 }
0x15ee   :  { %2954 = vrsqrt.f32 %v2389_v5 }
0x15f9   :  { %v2953_v6 = vpop.eup %2952 }
0x15fa   :  { %v2394_v31 = vmul.f32 %v2953_v6, %v2378_v55 }
0x15fb   :  { %v2955_v7 = vpop.eup %2954 }
0x15fc   :  { %v2393_v8 = vmul.f32 %v2955_v7, %v2377_v57  ;;  %v2402_v9 = vmul.f32 %v2594_v33, %v2394_v31 }
0x15fe   :  { %v2401_v11 = vmul.f32 %v2594_v33, %v2393_v8  ;;  %v2410_v13 = vadd.f32 %v2595_v10, %v2402_v9 }
0x1600   :  { %v2409_v12 = vadd.f32 %v2595_v10, %v2401_v11 }
0x1602   :  { %2885 = vmatprep.mubr.msk.f32.mxu1 %vm60_vm0, %v2409_v12 }
0x1603   :  { %2886 = vmatmul.mubr.msk.f32.vlgmr.msra.gmra.mxu1 %vm60_vm0, %v2410_v13 }
0x16c3   :  { %v2887_v15 = vpop.f32.mrf.mxu1 }
0x16c4   :  { %v2500_v16 = vadd.f32 %v2887_v15, %v2596_v14 }
0x16c5   :  { %v2494_v17 = vpop.f32.mrf.mxu1 }
0x16c6   :  { %2505 = vst.msk [vmem:[%s3477_s17 + $0x8] sm:$0xff] %vm2503_vm5, %v2500_v16  ;;  %v2495_v18 = vadd.f32 %v2596_v14, %v2494_v17 }
0x16c8   :  { %2504 = vst.msk [vmem:[%s3477_s17] sm:$0xff] %vm2503_vm5, %v2495_v18 }

</bundles_post_ra>
